<compile_context>
chip_gen: v7x
topology: tpu7x:2x2x1
jax: 0.10.0
libtpu: 0.0.40
codegen_flags: <defaults>
</compile_context>

<pallas_src>
import functools

import jax
import jax.numpy as jnp
from jax import lax
from jax.experimental import pallas as pl
from jax.experimental.pallas import tpu as pltpu


# ----------------------------- Pallas kernel --------------------------------
def _fused_sa_kernel(x_ref, t1_ref, b1_ref, t2_ref, b2_ref, hwm1_ref, hwm2_ref,
                     o_ref, xpad_ref, *, C, D, H, W, TD):
    """Fused AvgPool3d -> Conv1+ReLU -> Conv2+Sigmoid+1 on one depth tile.

    x_ref   : (1, D, H, W*C)           one batch element, (w,c)-folded lanes
    t*_ref  : (3, 3, K, N)             banded-Toeplitz conv weights per (kd,kh)
    b*_ref  : (1, N)                   lane-periodic biases
    hwm*_ref: (Hh, Lh)                 static H/W ring masks (1 inside, 0 ring)
    o_ref   : (1, TD, H*W*C)           lane-dense output slab
    xpad_ref: (D+6, H+6, (W+6)*C)      VMEM scratch, zero-padded volume (halo 3)
    """
    j = pl.program_id(1)
    dstart = pl.multiple_of(j * TD, TD)

    # ---- in-kernel zero padding (halo=3): no HBM jnp.pad round trip ----------
    # Rebuilt only when the batch element changes; the depth axis is marked
    # "arbitrary" so j==0 always runs before j>0 of the same batch element.
    @pl.when(j == 0)
    def _():
        xpad_ref[...] = jnp.zeros_like(xpad_ref)
        xpad_ref[3:3 + D, 3:3 + H, 3 * C:(3 + W) * C] = x_ref[0].astype(jnp.float32)

    # Haloed slab for this tile: padded depth rows [dstart, dstart+TD+6)
    # == global d in [dstart-3, dstart+TD+3).
    xs = xpad_ref[pl.ds(dstart, TD + 6), :, :]

    # ---- stage 1: separable 3x3x3 avg-pool (8 adds + 1 scale, VPU only) ------
    L4 = (W + 4) * C
    sw = xs[:, :, 0:L4] + xs[:, :, C:C + L4] + xs[:, :, 2 * C:2 * C + L4]
    sh = sw[:, 0:H + 4, :] + sw[:, 1:H + 5, :] + sw[:, 2:H + 6, :]
    pool = (sh[0:TD + 4] + sh[1:TD + 5] + sh[2:TD + 6]) * (1.0 / 27.0)
    # pool[i, j, w'*C+c] sits at global (dstart+i-2, j-2, w'-2).

    # Conv1's zero padding: zero pool outside the valid DxHxW volume.
    di = lax.broadcasted_iota(jnp.int32, pool.shape, 0)
    d_ok = (di >= 2 - dstart) & (di < D + 2 - dstart)
    pool = jnp.where(d_ok, pool * hwm1_ref[...], 0.0)

    def conv3(src, t_ref, b_ref, do, ho, no):
        """3x3x3 conv on (w,c)-folded lanes: 9 MXU matmuls vs banded-Toeplitz RHS."""
        k = src.shape[-1]
        acc = jnp.zeros((do * ho, no), jnp.float32)
        for a in range(3):
            for b in range(3):
                lhs = src[a:a + do, b:b + ho, :].reshape(do * ho, k)
                acc = acc + jnp.dot(lhs, t_ref[a, b, :, :],
                                    preferred_element_type=jnp.float32)
        return (acc + b_ref[...]).reshape(do, ho, no)

    # ---- stage 2: Conv1 + ReLU on a 1-voxel halo region -----------------------
    y1 = jnp.maximum(conv3(pool, t1_ref, b1_ref, TD + 2, H + 2, (W + 2) * C), 0.0)
    di = lax.broadcasted_iota(jnp.int32, y1.shape, 0)
    d_ok = (di >= 1 - dstart) & (di < D + 1 - dstart)
    y1 = jnp.where(d_ok, y1 * hwm2_ref[...], 0.0)          # Conv2's zero padding

    # ---- stage 3: Conv2 + Sigmoid + 1, lane-dense store -----------------------
    y2 = jax.nn.sigmoid(conv3(y1, t2_ref, b2_ref, TD, H, W * C)) + 1.0  # (TD,H,W*C)
    # Assemble the (1, TD, H*W*C) lane-dense slab via a lane-axis concat.
    y2m = jnp.concatenate([y2[:, t, :] for t in range(H)], axis=-1)     # (TD, H*W*C)
    o_ref[...] = y2m[None].astype(o_ref.dtype)


# ------------------------------ JAX wrapper ----------------------------------
def _toeplitz_weights(wt, wo, c):
    """wt: (Co, Ci, 3, 3, 3) (PyTorch OIDHW).  Returns T of shape
    (3, 3, (wo+2)*c, wo*c) with T[a,b][(r+cw)*c + ci, r*c + co] = wt[co,ci,a,b,cw],
    so src2d(M, (wo+2)*c) @ T[a,b] does the W-tap gather and channel mix at once."""
    band = jnp.zeros((3, wo + 2, wo), wt.dtype)
    r = jnp.arange(wo)
    for cw in range(3):
        band = band.at[cw, r + cw, r].set(1.0)
    blk = jnp.transpose(wt, (2, 3, 4, 1, 0))                 # (a, b, cw, ci, co)
    t = jnp.einsum("cRr,abcio->abRiro", band, blk)           # (a, b, R, ci, r, co)
    return t.reshape(3, 3, (wo + 2) * c, wo * c)


def _hw_ring_mask(h, w, c, halo):
    """1.0 inside the valid HxW region, 0.0 on the halo ring ((w,c)-folded lanes)."""
    hp, lp = h + 2 * halo, (w + 2 * halo) * c
    hm = (jnp.arange(hp) >= halo) & (jnp.arange(hp) < halo + h)
    lm = (jnp.arange(lp) >= halo * c) & (jnp.arange(lp) < (halo + w) * c)
    return (hm[:, None] & lm[None, :]).astype(jnp.float32)


def _pick_depth_tile(d, h, w, c, budget=36 * 1024 * 1024):
    """Largest legal depth tile (divisor of d, %8==0 or ==d) fitting the VMEM budget."""
    lanes = lambda x: ((x + 127) // 128) * 128
    f = 4  # f32

    def est(td):
        resident = (d + 6) * (h + 6) * lanes((w + 6) * c) * f       # xpad scratch
        resident += 2 * d * h * lanes(w * c) * f                    # input block x2
        per_tile = (td + 4) * (h + 4) * lanes((w + 4) * c) * f      # pool
        per_tile += (td + 2) * (h + 2) * lanes((w + 2) * c) * f     # y1
        per_tile += 2 * td * lanes(h * w * c) * f                   # output block x2
        return resident + 3 * per_tile                              # slack for temps

    divisors = [t for t in range(1, d + 1) if d % t == 0]
    cands = [t for t in divisors if t == d or t % 8 == 0]
    fitting = [t for t in cands if est(t) <= budget]
    return max(fitting) if fitting else min(cands)


def sa_module_forward(x, w1, b1, w2, b2):
    """x: (N, C, D, H, W) f32; w*: (C, C, 3, 3, 3) PyTorch OIDHW; b*: (C,)."""
    n, c, d, h, w = x.shape
    # Lane-dense folded layout: (N, D, H, W*C), w-major / c-minor lanes.
    x_fold = jnp.transpose(x, (0, 2, 3, 4, 1)).reshape(n, d, h, w * c)

    t1 = _toeplitz_weights(w1, w + 2, c)                    # (3,3,(W+4)C,(W+2)C)
    t2 = _toeplitz_weights(w2, w, c)                        # (3,3,(W+2)C, W*C)
    b1l = jnp.tile(b1, w + 2).reshape(1, (w + 2) * c)
    b2l = jnp.tile(b2, w).reshape(1, w * c)
    hwm1 = _hw_ring_mask(h, w, c, 2)                        # (H+4, (W+4)*C)
    hwm2 = _hw_ring_mask(h, w, c, 1)                        # (H+2, (W+2)*C)

    td = _pick_depth_tile(d, h, w, c)
    grid = (n, d // td)

    out_fold = pl.pallas_call(
        functools.partial(_fused_sa_kernel, C=c, D=d, H=h, W=w, TD=td),
        out_shape=jax.ShapeDtypeStruct((n, d, h * w * c), x.dtype),
        grid=grid,
        in_specs=[
            # One batch element, unpadded; constant block index along the depth
            # axis -> DMA'd once per batch element, padded in-kernel.
            pl.BlockSpec((1, d, h, w * c), lambda i, j: (i, 0, 0, 0)),
            pl.BlockSpec(t1.shape, lambda i, j: (0, 0, 0, 0)),
            pl.BlockSpec(b1l.shape, lambda i, j: (0, 0)),
            pl.BlockSpec(t2.shape, lambda i, j: (0, 0, 0, 0)),
            pl.BlockSpec(b2l.shape, lambda i, j: (0, 0)),
            pl.BlockSpec(hwm1.shape, lambda i, j: (0, 0)),
            pl.BlockSpec(hwm2.shape, lambda i, j: (0, 0)),
        ],
        out_specs=pl.BlockSpec((1, td, h * w * c), lambda i, j: (i, j, 0)),
        scratch_shapes=[pltpu.VMEM((d + 6, h + 6, (w + 6) * c), jnp.float32)],
        compiler_params=pltpu.CompilerParams(
            # Batch parallel (megacore on v7x); depth "arbitrary" so the
            # per-batch xpad fill at j==0 is ordered before j>0.
            dimension_semantics=("parallel", "arbitrary"),
            vmem_limit_bytes=48 * 1024 * 1024,
        ),
    )(x_fold, t1, b1l, t2, b2l, hwm1, hwm2)

    out = out_fold.reshape(n, d, h, w, c)
    return jnp.transpose(out, (0, 4, 1, 2, 3))               # NCDHW


# --------------------------- pure-JAX reference ------------------------------
def sa_module_ref(x, w1, b1, w2, b2):
    pool = lax.reduce_window(
        x, 0.0, lax.add, (1, 1, 3, 3, 3), (1, 1, 1, 1, 1),
        ((0, 0), (0, 0), (1, 1), (1, 1), (1, 1)),
    ) / 27.0
    dn = lax.conv_dimension_numbers(x.shape, w1.shape, ("NCDHW", "OIDHW", "NCDHW"))
    t = lax.conv_general_dilated(pool, w1, (1, 1, 1), ((1, 1),) * 3,
                                 dimension_numbers=dn,
                                 precision=lax.Precision.HIGHEST)
    t = t + b1[None, :, None, None, None]
    t = jnp.maximum(t, 0.0)
    t = lax.conv_general_dilated(t, w2, (1, 1, 1), ((1, 1),) * 3,
                                 dimension_numbers=dn,
                                 precision=lax.Precision.HIGHEST)
    t = t + b2[None, :, None, None, None]
    return jax.nn.sigmoid(t) + 1.0


# ---------------------------------- main --------------------------------------
if __name__ == "__main__":
    key = jax.random.PRNGKey(0)
    kx, kw1, kb1, kw2, kb2 = jax.random.split(key, 5)

    N, C, D, H, W = 2, 4, 4, 8, 8  # SA_Module(in_channel=4, kernel_size=3)
    x = jax.random.normal(kx, (N, C, D, H, W), jnp.float32)

    # Deterministic synthetic parameters (Conv3d weight shape: (out, in, 3, 3, 3)).
    w1 = 0.1 * jax.random.normal(kw1, (C, C, 3, 3, 3), jnp.float32)
    b1 = 0.1 * jax.random.normal(kb1, (C,), jnp.float32)
    w2 = 0.1 * jax.random.normal(kw2, (C, C, 3, 3, 3), jnp.float32)
    b2 = 0.1 * jax.random.normal(kb2, (C,), jnp.float32)

    out = jax.block_until_ready(jax.jit(sa_module_forward)(x, w1, b1, w2, b2))
    ref = jax.block_until_ready(sa_module_ref(x, w1, b1, w2, b2))

    assert out.shape == x.shape, (out.shape, x.shape)
    err = float(jnp.max(jnp.abs(out - ref)))
    assert jnp.allclose(out, ref, rtol=1e-3, atol=1e-3), err

    print("KERNEL_OK")
</pallas_src>

<mosaic_0001>
module attributes {stable_mosaic.version = 11 : i64} {
  func.func @_fused_sa_kernel(%arg0: i32, %arg1: i32, %arg2: memref<1x4x8x32xf32, #tpu.memory_space<vmem>>, %arg3: memref<3x3x48x40xf32, #tpu.memory_space<vmem>>, %arg4: memref<1x40xf32, #tpu.memory_space<vmem>>, %arg5: memref<3x3x40x32xf32, #tpu.memory_space<vmem>>, %arg6: memref<1x32xf32, #tpu.memory_space<vmem>>, %arg7: memref<12x48xf32, #tpu.memory_space<vmem>>, %arg8: memref<10x40xf32, #tpu.memory_space<vmem>>, %arg9: memref<1x4x256xf32, #tpu.memory_space<vmem>>, %arg10: memref<10x14x56xf32, #tpu.memory_space<vmem>>) attributes {dimension_semantics = [#tpu.dimension_semantics<parallel>, #tpu.dimension_semantics<arbitrary>], iteration_bounds = array<i64: 2, 1>, scalar_prefetch = 0 : i64, scratch_operands = 1 : i64, tpu.core_type = #tpu.core_type<tc>, window_params = [{transform_indices = @transform_0, window_bounds = array<i64: 1, 4, 8, 32>}, {pipeline_mode = #tpu.pipeline_mode<synchronous>, transform_indices = @transform_1, window_bounds = array<i64: 3, 3, 48, 40>}, {pipeline_mode = #tpu.pipeline_mode<synchronous>, transform_indices = @transform_2, window_bounds = array<i64: 1, 40>}, {pipeline_mode = #tpu.pipeline_mode<synchronous>, transform_indices = @transform_3, window_bounds = array<i64: 3, 3, 40, 32>}, {pipeline_mode = #tpu.pipeline_mode<synchronous>, transform_indices = @transform_4, window_bounds = array<i64: 1, 32>}, {pipeline_mode = #tpu.pipeline_mode<synchronous>, transform_indices = @transform_5, window_bounds = array<i64: 12, 48>}, {pipeline_mode = #tpu.pipeline_mode<synchronous>, transform_indices = @transform_6, window_bounds = array<i64: 10, 40>}, {transform_indices = @transform_7, window_bounds = array<i64: 1, 4, 256>}]} {
    %c4_i32 = arith.constant 4 : i32
    %0 = arith.muli %arg1, %c4_i32 : i32
    %1 = tpu.assume_multiple %0, 4 : i32
    %c0_i32 = arith.constant 0 : i32
    %2 = arith.cmpi eq, %arg1, %c0_i32 : i32
    %3 = arith.extui %2 : i1 to i32
    %c0_i32_0 = arith.constant 0 : i32
    %4 = arith.cmpi ne, %3, %c0_i32_0 : i32
    scf.if %4 {
      %cst_108 = arith.constant 0.000000e+00 : f32
      %198 = vector.broadcast %cst_108 : f32 to vector<10x14x56xf32>
      %c0_109 = arith.constant 0 : index
      %c0_110 = arith.constant 0 : index
      %c0_111 = arith.constant 0 : index
      %199 = vector.load %arg10[%c0_109, %c0_110, %c0_111] : memref<10x14x56xf32, #tpu.memory_space<vmem>>, vector<10x14x56xf32>
      tpu.vector_store %arg10[%c0_109, %c0_110, %c0_111], %198 {strides = array<i32>} : memref<10x14x56xf32, #tpu.memory_space<vmem>>, vector<10x14x56xf32>,
      %c0_112 = arith.constant 0 : index
      %c0_113 = arith.constant 0 : index
      %c0_114 = arith.constant 0 : index
      %c0_115 = arith.constant 0 : index
      %200 = vector.load %arg2[%c0_112, %c0_113, %c0_114, %c0_115] : memref<1x4x8x32xf32, #tpu.memory_space<vmem>>, vector<1x4x8x32xf32>
      %201 = vector.shape_cast %200 : vector<1x4x8x32xf32> to vector<4x8x32xf32>
      %c3 = arith.constant 3 : index
      %c3_116 = arith.constant 3 : index
      %c12 = arith.constant 12 : index
      %202 = vector.load %arg10[%c3, %c3_116, %c12] : memref<10x14x56xf32, #tpu.memory_space<vmem>>, vector<4x8x32xf32>
      tpu.vector_store %arg10[%c3, %c3_116, %c12], %201 {strides = array<i32>} : memref<10x14x56xf32, #tpu.memory_space<vmem>>, vector<4x8x32xf32>,
    } else {
    }
    %5 = arith.index_cast %1 : i32 to index
    %c0 = arith.constant 0 : index
    %c0_1 = arith.constant 0 : index
    %6 = vector.load %arg10[%5, %c0, %c0_1] : memref<10x14x56xf32, #tpu.memory_space<vmem>>, vector<10x14x56xf32>
    %7 = vector.extract_strided_slice %6 {offsets = [0, 0, 0], sizes = [10, 14, 48], strides = [1, 1, 1]} : vector<10x14x56xf32> to vector<10x14x48xf32>
    %8 = vector.extract_strided_slice %6 {offsets = [0, 0, 4], sizes = [10, 14, 48], strides = [1, 1, 1]} : vector<10x14x56xf32> to vector<10x14x48xf32>
    %9 = arith.addf %7, %8 : vector<10x14x48xf32>
    %10 = vector.extract_strided_slice %6 {offsets = [0, 0, 8], sizes = [10, 14, 48], strides = [1, 1, 1]} : vector<10x14x56xf32> to vector<10x14x48xf32>
    %11 = arith.addf %9, %10 : vector<10x14x48xf32>
    %12 = vector.extract_strided_slice %11 {offsets = [0, 0, 0], sizes = [10, 12, 48], strides = [1, 1, 1]} : vector<10x14x48xf32> to vector<10x12x48xf32>
    %13 = vector.extract_strided_slice %11 {offsets = [0, 1, 0], sizes = [10, 12, 48], strides = [1, 1, 1]} : vector<10x14x48xf32> to vector<10x12x48xf32>
    %14 = arith.addf %12, %13 : vector<10x12x48xf32>
    %15 = vector.extract_strided_slice %11 {offsets = [0, 2, 0], sizes = [10, 12, 48], strides = [1, 1, 1]} : vector<10x14x48xf32> to vector<10x12x48xf32>
    %16 = arith.addf %14, %15 : vector<10x12x48xf32>
    %17 = vector.extract_strided_slice %16 {offsets = [0, 0, 0], sizes = [8, 12, 48], strides = [1, 1, 1]} : vector<10x12x48xf32> to vector<8x12x48xf32>
    %18 = vector.extract_strided_slice %16 {offsets = [1, 0, 0], sizes = [8, 12, 48], strides = [1, 1, 1]} : vector<10x12x48xf32> to vector<8x12x48xf32>
    %19 = arith.addf %17, %18 : vector<8x12x48xf32>
    %20 = vector.extract_strided_slice %16 {offsets = [2, 0, 0], sizes = [8, 12, 48], strides = [1, 1, 1]} : vector<10x12x48xf32> to vector<8x12x48xf32>
    %21 = arith.addf %19, %20 : vector<8x12x48xf32>
    %cst = arith.constant 0.0370370373 : f32
    %22 = vector.broadcast %cst : f32 to vector<8x12x48xf32>
    %23 = arith.mulf %21, %22 : vector<8x12x48xf32>
    %24 = tpu.iota {dimensions = array<i32: 0>} : vector<8x12x48xi32>
    %c2_i32 = arith.constant 2 : i32
    %25 = arith.subi %c2_i32, %1 : i32
    %26 = vector.broadcast %25 : i32 to vector<8x12x48xi32>
    %27 = arith.cmpi sge, %24, %26 : vector<8x12x48xi32>
    %c6_i32 = arith.constant 6 : i32
    %28 = arith.subi %c6_i32, %1 : i32
    %29 = vector.broadcast %28 : i32 to vector<8x12x48xi32>
    %30 = arith.cmpi slt, %24, %29 : vector<8x12x48xi32>
    %31 = arith.andi %27, %30 : vector<8x12x48xi1>
    %c0_2 = arith.constant 0 : index
    %c0_3 = arith.constant 0 : index
    %32 = vector.load %arg7[%c0_2, %c0_3] : memref<12x48xf32, #tpu.memory_space<vmem>>, vector<12x48xf32>
    %33 = vector.shape_cast %32 : vector<12x48xf32> to vector<1x12x48xf32>
    %34 = vector.broadcast %33 : vector<1x12x48xf32> to vector<8x12x48xf32>
    %35 = arith.mulf %23, %34 : vector<8x12x48xf32>
    %cst_4 = arith.constant 0.000000e+00 : f32
    %36 = vector.broadcast %cst_4 : f32 to vector<8x12x48xf32>
    %37 = arith.select %31, %35, %36 : vector<8x12x48xi1>, vector<8x12x48xf32>
    %cst_5 = arith.constant 0.000000e+00 : f32
    %38 = vector.broadcast %cst_5 : f32 to vector<60x40xf32>
    %39 = vector.extract_strided_slice %37 {offsets = [0, 0, 0], sizes = [6, 10, 48], strides = [1, 1, 1]} : vector<8x12x48xf32> to vector<6x10x48xf32>
    %40 = vector.shape_cast %39 : vector<6x10x48xf32> to vector<60x48xf32>
    %c0_6 = arith.constant 0 : index
    %c0_7 = arith.constant 0 : index
    %c0_8 = arith.constant 0 : index
    %c0_9 = arith.constant 0 : index
    %41 = vector.load %arg3[%c0_6, %c0_7, %c0_8, %c0_9] : memref<3x3x48x40xf32, #tpu.memory_space<vmem>>, vector<1x1x48x40xf32>
    %42 = vector.shape_cast %41 : vector<1x1x48x40xf32> to vector<48x40xf32>
    %cst_10 = arith.constant dense<0.000000e+00> : vector<60x40xf32>
    %43 = tpu.matmul %40, %42, %cst_10 {dimension_numbers = #tpu.dot_dimension_numbers<[1], [0], [0], [1], [0, 0, 1, 1], [], []>} : vector<60x48xf32>, vector<48x40xf32>, vector<60x40xf32> -> vector<60x40xf32>
    %44 = arith.addf %38, %43 : vector<60x40xf32>
    %45 = vector.extract_strided_slice %37 {offsets = [0, 1, 0], sizes = [6, 10, 48], strides = [1, 1, 1]} : vector<8x12x48xf32> to vector<6x10x48xf32>
    %46 = vector.shape_cast %45 : vector<6x10x48xf32> to vector<60x48xf32>
    %c0_11 = arith.constant 0 : index
    %c1 = arith.constant 1 : index
    %c0_12 = arith.constant 0 : index
    %c0_13 = arith.constant 0 : index
    %47 = vector.load %arg3[%c0_11, %c1, %c0_12, %c0_13] : memref<3x3x48x40xf32, #tpu.memory_space<vmem>>, vector<1x1x48x40xf32>
    %48 = vector.shape_cast %47 : vector<1x1x48x40xf32> to vector<48x40xf32>
    %cst_14 = arith.constant dense<0.000000e+00> : vector<60x40xf32>
    %49 = tpu.matmul %46, %48, %cst_14 {dimension_numbers = #tpu.dot_dimension_numbers<[1], [0], [0], [1], [0, 0, 1, 1], [], []>} : vector<60x48xf32>, vector<48x40xf32>, vector<60x40xf32> -> vector<60x40xf32>
    %50 = arith.addf %44, %49 : vector<60x40xf32>
    %51 = vector.extract_strided_slice %37 {offsets = [0, 2, 0], sizes = [6, 10, 48], strides = [1, 1, 1]} : vector<8x12x48xf32> to vector<6x10x48xf32>
    %52 = vector.shape_cast %51 : vector<6x10x48xf32> to vector<60x48xf32>
    %c0_15 = arith.constant 0 : index
    %c2 = arith.constant 2 : index
    %c0_16 = arith.constant 0 : index
    %c0_17 = arith.constant 0 : index
    %53 = vector.load %arg3[%c0_15, %c2, %c0_16, %c0_17] : memref<3x3x48x40xf32, #tpu.memory_space<vmem>>, vector<1x1x48x40xf32>
    %54 = vector.shape_cast %53 : vector<1x1x48x40xf32> to vector<48x40xf32>
    %cst_18 = arith.constant dense<0.000000e+00> : vector<60x40xf32>
    %55 = tpu.matmul %52, %54, %cst_18 {dimension_numbers = #tpu.dot_dimension_numbers<[1], [0], [0], [1], [0, 0, 1, 1], [], []>} : vector<60x48xf32>, vector<48x40xf32>, vector<60x40xf32> -> vector<60x40xf32>
    %56 = arith.addf %50, %55 : vector<60x40xf32>
    %57 = vector.extract_strided_slice %37 {offsets = [1, 0, 0], sizes = [6, 10, 48], strides = [1, 1, 1]} : vector<8x12x48xf32> to vector<6x10x48xf32>
    %58 = vector.shape_cast %57 : vector<6x10x48xf32> to vector<60x48xf32>
    %c1_19 = arith.constant 1 : index
    %c0_20 = arith.constant 0 : index
    %c0_21 = arith.constant 0 : index
    %c0_22 = arith.constant 0 : index
    %59 = vector.load %arg3[%c1_19, %c0_20, %c0_21, %c0_22] : memref<3x3x48x40xf32, #tpu.memory_space<vmem>>, vector<1x1x48x40xf32>
    %60 = vector.shape_cast %59 : vector<1x1x48x40xf32> to vector<48x40xf32>
    %cst_23 = arith.constant dense<0.000000e+00> : vector<60x40xf32>
    %61 = tpu.matmul %58, %60, %cst_23 {dimension_numbers = #tpu.dot_dimension_numbers<[1], [0], [0], [1], [0, 0, 1, 1], [], []>} : vector<60x48xf32>, vector<48x40xf32>, vector<60x40xf32> -> vector<60x40xf32>
    %62 = arith.addf %56, %61 : vector<60x40xf32>
    %63 = vector.extract_strided_slice %37 {offsets = [1, 1, 0], sizes = [6, 10, 48], strides = [1, 1, 1]} : vector<8x12x48xf32> to vector<6x10x48xf32>
    %64 = vector.shape_cast %63 : vector<6x10x48xf32> to vector<60x48xf32>
    %c1_24 = arith.constant 1 : index
    %c1_25 = arith.constant 1 : index
    %c0_26 = arith.constant 0 : index
    %c0_27 = arith.constant 0 : index
    %65 = vector.load %arg3[%c1_24, %c1_25, %c0_26, %c0_27] : memref<3x3x48x40xf32, #tpu.memory_space<vmem>>, vector<1x1x48x40xf32>
    %66 = vector.shape_cast %65 : vector<1x1x48x40xf32> to vector<48x40xf32>
    %cst_28 = arith.constant dense<0.000000e+00> : vector<60x40xf32>
    %67 = tpu.matmul %64, %66, %cst_28 {dimension_numbers = #tpu.dot_dimension_numbers<[1], [0], [0], [1], [0, 0, 1, 1], [], []>} : vector<60x48xf32>, vector<48x40xf32>, vector<60x40xf32> -> vector<60x40xf32>
    %68 = arith.addf %62, %67 : vector<60x40xf32>
    %69 = vector.extract_strided_slice %37 {offsets = [1, 2, 0], sizes = [6, 10, 48], strides = [1, 1, 1]} : vector<8x12x48xf32> to vector<6x10x48xf32>
    %70 = vector.shape_cast %69 : vector<6x10x48xf32> to vector<60x48xf32>
    %c1_29 = arith.constant 1 : index
    %c2_30 = arith.constant 2 : index
    %c0_31 = arith.constant 0 : index
    %c0_32 = arith.constant 0 : index
    %71 = vector.load %arg3[%c1_29, %c2_30, %c0_31, %c0_32] : memref<3x3x48x40xf32, #tpu.memory_space<vmem>>, vector<1x1x48x40xf32>
    %72 = vector.shape_cast %71 : vector<1x1x48x40xf32> to vector<48x40xf32>
    %cst_33 = arith.constant dense<0.000000e+00> : vector<60x40xf32>
    %73 = tpu.matmul %70, %72, %cst_33 {dimension_numbers = #tpu.dot_dimension_numbers<[1], [0], [0], [1], [0, 0, 1, 1], [], []>} : vector<60x48xf32>, vector<48x40xf32>, vector<60x40xf32> -> vector<60x40xf32>
    %74 = arith.addf %68, %73 : vector<60x40xf32>
    %75 = vector.extract_strided_slice %37 {offsets = [2, 0, 0], sizes = [6, 10, 48], strides = [1, 1, 1]} : vector<8x12x48xf32> to vector<6x10x48xf32>
    %76 = vector.shape_cast %75 : vector<6x10x48xf32> to vector<60x48xf32>
    %c2_34 = arith.constant 2 : index
    %c0_35 = arith.constant 0 : index
    %c0_36 = arith.constant 0 : index
    %c0_37 = arith.constant 0 : index
    %77 = vector.load %arg3[%c2_34, %c0_35, %c0_36, %c0_37] : memref<3x3x48x40xf32, #tpu.memory_space<vmem>>, vector<1x1x48x40xf32>
    %78 = vector.shape_cast %77 : vector<1x1x48x40xf32> to vector<48x40xf32>
    %cst_38 = arith.constant dense<0.000000e+00> : vector<60x40xf32>
    %79 = tpu.matmul %76, %78, %cst_38 {dimension_numbers = #tpu.dot_dimension_numbers<[1], [0], [0], [1], [0, 0, 1, 1], [], []>} : vector<60x48xf32>, vector<48x40xf32>, vector<60x40xf32> -> vector<60x40xf32>
    %80 = arith.addf %74, %79 : vector<60x40xf32>
    %81 = vector.extract_strided_slice %37 {offsets = [2, 1, 0], sizes = [6, 10, 48], strides = [1, 1, 1]} : vector<8x12x48xf32> to vector<6x10x48xf32>
    %82 = vector.shape_cast %81 : vector<6x10x48xf32> to vector<60x48xf32>
    %c2_39 = arith.constant 2 : index
    %c1_40 = arith.constant 1 : index
    %c0_41 = arith.constant 0 : index
    %c0_42 = arith.constant 0 : index
    %83 = vector.load %arg3[%c2_39, %c1_40, %c0_41, %c0_42] : memref<3x3x48x40xf32, #tpu.memory_space<vmem>>, vector<1x1x48x40xf32>
    %84 = vector.shape_cast %83 : vector<1x1x48x40xf32> to vector<48x40xf32>
    %cst_43 = arith.constant dense<0.000000e+00> : vector<60x40xf32>
    %85 = tpu.matmul %82, %84, %cst_43 {dimension_numbers = #tpu.dot_dimension_numbers<[1], [0], [0], [1], [0, 0, 1, 1], [], []>} : vector<60x48xf32>, vector<48x40xf32>, vector<60x40xf32> -> vector<60x40xf32>
    %86 = arith.addf %80, %85 : vector<60x40xf32>
    %87 = vector.extract_strided_slice %37 {offsets = [2, 2, 0], sizes = [6, 10, 48], strides = [1, 1, 1]} : vector<8x12x48xf32> to vector<6x10x48xf32>
    %88 = vector.shape_cast %87 : vector<6x10x48xf32> to vector<60x48xf32>
    %c2_44 = arith.constant 2 : index
    %c2_45 = arith.constant 2 : index
    %c0_46 = arith.constant 0 : index
    %c0_47 = arith.constant 0 : index
    %89 = vector.load %arg3[%c2_44, %c2_45, %c0_46, %c0_47] : memref<3x3x48x40xf32, #tpu.memory_space<vmem>>, vector<1x1x48x40xf32>
    %90 = vector.shape_cast %89 : vector<1x1x48x40xf32> to vector<48x40xf32>
    %cst_48 = arith.constant dense<0.000000e+00> : vector<60x40xf32>
    %91 = tpu.matmul %88, %90, %cst_48 {dimension_numbers = #tpu.dot_dimension_numbers<[1], [0], [0], [1], [0, 0, 1, 1], [], []>} : vector<60x48xf32>, vector<48x40xf32>, vector<60x40xf32> -> vector<60x40xf32>
    %92 = arith.addf %86, %91 : vector<60x40xf32>
    %c0_49 = arith.constant 0 : index
    %c0_50 = arith.constant 0 : index
    %93 = vector.load %arg4[%c0_49, %c0_50] : memref<1x40xf32, #tpu.memory_space<vmem>>, vector<1x40xf32>
    %94 = vector.broadcast %93 : vector<1x40xf32> to vector<60x40xf32>
    %95 = arith.addf %92, %94 : vector<60x40xf32>
    %96 = vector.shape_cast %95 : vector<60x40xf32> to vector<6x10x40xf32>
    %cst_51 = arith.constant 0.000000e+00 : f32
    %97 = vector.broadcast %cst_51 : f32 to vector<6x10x40xf32>
    %98 = arith.maximumf %96, %97 : vector<6x10x40xf32>
    %99 = tpu.iota {dimensions = array<i32: 0>} : vector<6x10x40xi32>
    %c1_i32 = arith.constant 1 : i32
    %100 = arith.subi %c1_i32, %1 : i32
    %101 = vector.broadcast %100 : i32 to vector<6x10x40xi32>
    %102 = arith.cmpi sge, %99, %101 : vector<6x10x40xi32>
    %c5_i32 = arith.constant 5 : i32
    %103 = arith.subi %c5_i32, %1 : i32
    %104 = vector.broadcast %103 : i32 to vector<6x10x40xi32>
    %105 = arith.cmpi slt, %99, %104 : vector<6x10x40xi32>
    %106 = arith.andi %102, %105 : vector<6x10x40xi1>
    %c0_52 = arith.constant 0 : index
    %c0_53 = arith.constant 0 : index
    %107 = vector.load %arg8[%c0_52, %c0_53] : memref<10x40xf32, #tpu.memory_space<vmem>>, vector<10x40xf32>
    %108 = vector.shape_cast %107 : vector<10x40xf32> to vector<1x10x40xf32>
    %109 = vector.broadcast %108 : vector<1x10x40xf32> to vector<6x10x40xf32>
    %110 = arith.mulf %98, %109 : vector<6x10x40xf32>
    %cst_54 = arith.constant 0.000000e+00 : f32
    %111 = vector.broadcast %cst_54 : f32 to vector<6x10x40xf32>
    %112 = arith.select %106, %110, %111 : vector<6x10x40xi1>, vector<6x10x40xf32>
    %cst_55 = arith.constant 0.000000e+00 : f32
    %113 = vector.broadcast %cst_55 : f32 to vector<32x32xf32>
    %114 = vector.extract_strided_slice %112 {offsets = [0, 0, 0], sizes = [4, 8, 40], strides = [1, 1, 1]} : vector<6x10x40xf32> to vector<4x8x40xf32>
    %115 = vector.shape_cast %114 : vector<4x8x40xf32> to vector<32x40xf32>
    %c0_56 = arith.constant 0 : index
    %c0_57 = arith.constant 0 : index
    %c0_58 = arith.constant 0 : index
    %c0_59 = arith.constant 0 : index
    %116 = vector.load %arg5[%c0_56, %c0_57, %c0_58, %c0_59] : memref<3x3x40x32xf32, #tpu.memory_space<vmem>>, vector<1x1x40x32xf32>
    %117 = vector.shape_cast %116 : vector<1x1x40x32xf32> to vector<40x32xf32>
    %cst_60 = arith.constant dense<0.000000e+00> : vector<32x32xf32>
    %118 = tpu.matmul %115, %117, %cst_60 {dimension_numbers = #tpu.dot_dimension_numbers<[1], [0], [0], [1], [0, 0, 1, 1], [], []>} : vector<32x40xf32>, vector<40x32xf32>, vector<32x32xf32> -> vector<32x32xf32>
    %119 = arith.addf %113, %118 : vector<32x32xf32>
    %120 = vector.extract_strided_slice %112 {offsets = [0, 1, 0], sizes = [4, 8, 40], strides = [1, 1, 1]} : vector<6x10x40xf32> to vector<4x8x40xf32>
    %121 = vector.shape_cast %120 : vector<4x8x40xf32> to vector<32x40xf32>
    %c0_61 = arith.constant 0 : index
    %c1_62 = arith.constant 1 : index
    %c0_63 = arith.constant 0 : index
    %c0_64 = arith.constant 0 : index
    %122 = vector.load %arg5[%c0_61, %c1_62, %c0_63, %c0_64] : memref<3x3x40x32xf32, #tpu.memory_space<vmem>>, vector<1x1x40x32xf32>
    %123 = vector.shape_cast %122 : vector<1x1x40x32xf32> to vector<40x32xf32>
    %cst_65 = arith.constant dense<0.000000e+00> : vector<32x32xf32>
    %124 = tpu.matmul %121, %123, %cst_65 {dimension_numbers = #tpu.dot_dimension_numbers<[1], [0], [0], [1], [0, 0, 1, 1], [], []>} : vector<32x40xf32>, vector<40x32xf32>, vector<32x32xf32> -> vector<32x32xf32>
    %125 = arith.addf %119, %124 : vector<32x32xf32>
    %126 = vector.extract_strided_slice %112 {offsets = [0, 2, 0], sizes = [4, 8, 40], strides = [1, 1, 1]} : vector<6x10x40xf32> to vector<4x8x40xf32>
    %127 = vector.shape_cast %126 : vector<4x8x40xf32> to vector<32x40xf32>
    %c0_66 = arith.constant 0 : index
    %c2_67 = arith.constant 2 : index
    %c0_68 = arith.constant 0 : index
    %c0_69 = arith.constant 0 : index
    %128 = vector.load %arg5[%c0_66, %c2_67, %c0_68, %c0_69] : memref<3x3x40x32xf32, #tpu.memory_space<vmem>>, vector<1x1x40x32xf32>
    %129 = vector.shape_cast %128 : vector<1x1x40x32xf32> to vector<40x32xf32>
    %cst_70 = arith.constant dense<0.000000e+00> : vector<32x32xf32>
    %130 = tpu.matmul %127, %129, %cst_70 {dimension_numbers = #tpu.dot_dimension_numbers<[1], [0], [0], [1], [0, 0, 1, 1], [], []>} : vector<32x40xf32>, vector<40x32xf32>, vector<32x32xf32> -> vector<32x32xf32>
    %131 = arith.addf %125, %130 : vector<32x32xf32>
    %132 = vector.extract_strided_slice %112 {offsets = [1, 0, 0], sizes = [4, 8, 40], strides = [1, 1, 1]} : vector<6x10x40xf32> to vector<4x8x40xf32>
    %133 = vector.shape_cast %132 : vector<4x8x40xf32> to vector<32x40xf32>
    %c1_71 = arith.constant 1 : index
    %c0_72 = arith.constant 0 : index
    %c0_73 = arith.constant 0 : index
    %c0_74 = arith.constant 0 : index
    %134 = vector.load %arg5[%c1_71, %c0_72, %c0_73, %c0_74] : memref<3x3x40x32xf32, #tpu.memory_space<vmem>>, vector<1x1x40x32xf32>
    %135 = vector.shape_cast %134 : vector<1x1x40x32xf32> to vector<40x32xf32>
    %cst_75 = arith.constant dense<0.000000e+00> : vector<32x32xf32>
    %136 = tpu.matmul %133, %135, %cst_75 {dimension_numbers = #tpu.dot_dimension_numbers<[1], [0], [0], [1], [0, 0, 1, 1], [], []>} : vector<32x40xf32>, vector<40x32xf32>, vector<32x32xf32> -> vector<32x32xf32>
    %137 = arith.addf %131, %136 : vector<32x32xf32>
    %138 = vector.extract_strided_slice %112 {offsets = [1, 1, 0], sizes = [4, 8, 40], strides = [1, 1, 1]} : vector<6x10x40xf32> to vector<4x8x40xf32>
    %139 = vector.shape_cast %138 : vector<4x8x40xf32> to vector<32x40xf32>
    %c1_76 = arith.constant 1 : index
    %c1_77 = arith.constant 1 : index
    %c0_78 = arith.constant 0 : index
    %c0_79 = arith.constant 0 : index
    %140 = vector.load %arg5[%c1_76, %c1_77, %c0_78, %c0_79] : memref<3x3x40x32xf32, #tpu.memory_space<vmem>>, vector<1x1x40x32xf32>
    %141 = vector.shape_cast %140 : vector<1x1x40x32xf32> to vector<40x32xf32>
    %cst_80 = arith.constant dense<0.000000e+00> : vector<32x32xf32>
    %142 = tpu.matmul %139, %141, %cst_80 {dimension_numbers = #tpu.dot_dimension_numbers<[1], [0], [0], [1], [0, 0, 1, 1], [], []>} : vector<32x40xf32>, vector<40x32xf32>, vector<32x32xf32> -> vector<32x32xf32>
    %143 = arith.addf %137, %142 : vector<32x32xf32>
    %144 = vector.extract_strided_slice %112 {offsets = [1, 2, 0], sizes = [4, 8, 40], strides = [1, 1, 1]} : vector<6x10x40xf32> to vector<4x8x40xf32>
    %145 = vector.shape_cast %144 : vector<4x8x40xf32> to vector<32x40xf32>
    %c1_81 = arith.constant 1 : index
    %c2_82 = arith.constant 2 : index
    %c0_83 = arith.constant 0 : index
    %c0_84 = arith.constant 0 : index
    %146 = vector.load %arg5[%c1_81, %c2_82, %c0_83, %c0_84] : memref<3x3x40x32xf32, #tpu.memory_space<vmem>>, vector<1x1x40x32xf32>
    %147 = vector.shape_cast %146 : vector<1x1x40x32xf32> to vector<40x32xf32>
    %cst_85 = arith.constant dense<0.000000e+00> : vector<32x32xf32>
    %148 = tpu.matmul %145, %147, %cst_85 {dimension_numbers = #tpu.dot_dimension_numbers<[1], [0], [0], [1], [0, 0, 1, 1], [], []>} : vector<32x40xf32>, vector<40x32xf32>, vector<32x32xf32> -> vector<32x32xf32>
    %149 = arith.addf %143, %148 : vector<32x32xf32>
    %150 = vector.extract_strided_slice %112 {offsets = [2, 0, 0], sizes = [4, 8, 40], strides = [1, 1, 1]} : vector<6x10x40xf32> to vector<4x8x40xf32>
    %151 = vector.shape_cast %150 : vector<4x8x40xf32> to vector<32x40xf32>
    %c2_86 = arith.constant 2 : index
    %c0_87 = arith.constant 0 : index
    %c0_88 = arith.constant 0 : index
    %c0_89 = arith.constant 0 : index
    %152 = vector.load %arg5[%c2_86, %c0_87, %c0_88, %c0_89] : memref<3x3x40x32xf32, #tpu.memory_space<vmem>>, vector<1x1x40x32xf32>
    %153 = vector.shape_cast %152 : vector<1x1x40x32xf32> to vector<40x32xf32>
    %cst_90 = arith.constant dense<0.000000e+00> : vector<32x32xf32>
    %154 = tpu.matmul %151, %153, %cst_90 {dimension_numbers = #tpu.dot_dimension_numbers<[1], [0], [0], [1], [0, 0, 1, 1], [], []>} : vector<32x40xf32>, vector<40x32xf32>, vector<32x32xf32> -> vector<32x32xf32>
    %155 = arith.addf %149, %154 : vector<32x32xf32>
    %156 = vector.extract_strided_slice %112 {offsets = [2, 1, 0], sizes = [4, 8, 40], strides = [1, 1, 1]} : vector<6x10x40xf32> to vector<4x8x40xf32>
    %157 = vector.shape_cast %156 : vector<4x8x40xf32> to vector<32x40xf32>
    %c2_91 = arith.constant 2 : index
    %c1_92 = arith.constant 1 : index
    %c0_93 = arith.constant 0 : index
    %c0_94 = arith.constant 0 : index
    %158 = vector.load %arg5[%c2_91, %c1_92, %c0_93, %c0_94] : memref<3x3x40x32xf32, #tpu.memory_space<vmem>>, vector<1x1x40x32xf32>
    %159 = vector.shape_cast %158 : vector<1x1x40x32xf32> to vector<40x32xf32>
    %cst_95 = arith.constant dense<0.000000e+00> : vector<32x32xf32>
    %160 = tpu.matmul %157, %159, %cst_95 {dimension_numbers = #tpu.dot_dimension_numbers<[1], [0], [0], [1], [0, 0, 1, 1], [], []>} : vector<32x40xf32>, vector<40x32xf32>, vector<32x32xf32> -> vector<32x32xf32>
    %161 = arith.addf %155, %160 : vector<32x32xf32>
    %162 = vector.extract_strided_slice %112 {offsets = [2, 2, 0], sizes = [4, 8, 40], strides = [1, 1, 1]} : vector<6x10x40xf32> to vector<4x8x40xf32>
    %163 = vector.shape_cast %162 : vector<4x8x40xf32> to vector<32x40xf32>
    %c2_96 = arith.constant 2 : index
    %c2_97 = arith.constant 2 : index
    %c0_98 = arith.constant 0 : index
    %c0_99 = arith.constant 0 : index
    %164 = vector.load %arg5[%c2_96, %c2_97, %c0_98, %c0_99] : memref<3x3x40x32xf32, #tpu.memory_space<vmem>>, vector<1x1x40x32xf32>
    %165 = vector.shape_cast %164 : vector<1x1x40x32xf32> to vector<40x32xf32>
    %cst_100 = arith.constant dense<0.000000e+00> : vector<32x32xf32>
    %166 = tpu.matmul %163, %165, %cst_100 {dimension_numbers = #tpu.dot_dimension_numbers<[1], [0], [0], [1], [0, 0, 1, 1], [], []>} : vector<32x40xf32>, vector<40x32xf32>, vector<32x32xf32> -> vector<32x32xf32>
    %167 = arith.addf %161, %166 : vector<32x32xf32>
    %c0_101 = arith.constant 0 : index
    %c0_102 = arith.constant 0 : index
    %168 = vector.load %arg6[%c0_101, %c0_102] : memref<1x32xf32, #tpu.memory_space<vmem>>, vector<1x32xf32>
    %169 = vector.broadcast %168 : vector<1x32xf32> to vector<32x32xf32>
    %170 = arith.addf %167, %169 : vector<32x32xf32>
    %171 = vector.shape_cast %170 : vector<32x32xf32> to vector<4x8x32xf32>
    %172 = arith.negf %171 : vector<4x8x32xf32>
    %173 = math.exp %172 : vector<4x8x32xf32>
    %cst_103 = arith.constant 1.000000e+00 : f32
    %174 = vector.broadcast %cst_103 : f32 to vector<4x8x32xf32>
    %175 = arith.addf %174, %173 : vector<4x8x32xf32>
    %176 = arith.divf %174, %175 : vector<4x8x32xf32>
    %cst_104 = arith.constant 1.000000e+00 : f32
    %177 = vector.broadcast %cst_104 : f32 to vector<4x8x32xf32>
    %178 = arith.addf %176, %177 : vector<4x8x32xf32>
    %179 = vector.extract_strided_slice %178 {offsets = [0, 0, 0], sizes = [4, 1, 32], strides = [1, 1, 1]} : vector<4x8x32xf32> to vector<4x1x32xf32>
    %180 = vector.shape_cast %179 : vector<4x1x32xf32> to vector<4x32xf32>
    %181 = vector.extract_strided_slice %178 {offsets = [0, 1, 0], sizes = [4, 1, 32], strides = [1, 1, 1]} : vector<4x8x32xf32> to vector<4x1x32xf32>
    %182 = vector.shape_cast %181 : vector<4x1x32xf32> to vector<4x32xf32>
    %183 = vector.extract_strided_slice %178 {offsets = [0, 2, 0], sizes = [4, 1, 32], strides = [1, 1, 1]} : vector<4x8x32xf32> to vector<4x1x32xf32>
    %184 = vector.shape_cast %183 : vector<4x1x32xf32> to vector<4x32xf32>
    %185 = vector.extract_strided_slice %178 {offsets = [0, 3, 0], sizes = [4, 1, 32], strides = [1, 1, 1]} : vector<4x8x32xf32> to vector<4x1x32xf32>
    %186 = vector.shape_cast %185 : vector<4x1x32xf32> to vector<4x32xf32>
    %187 = vector.extract_strided_slice %178 {offsets = [0, 4, 0], sizes = [4, 1, 32], strides = [1, 1, 1]} : vector<4x8x32xf32> to vector<4x1x32xf32>
    %188 = vector.shape_cast %187 : vector<4x1x32xf32> to vector<4x32xf32>
    %189 = vector.extract_strided_slice %178 {offsets = [0, 5, 0], sizes = [4, 1, 32], strides = [1, 1, 1]} : vector<4x8x32xf32> to vector<4x1x32xf32>
    %190 = vector.shape_cast %189 : vector<4x1x32xf32> to vector<4x32xf32>
    %191 = vector.extract_strided_slice %178 {offsets = [0, 6, 0], sizes = [4, 1, 32], strides = [1, 1, 1]} : vector<4x8x32xf32> to vector<4x1x32xf32>
    %192 = vector.shape_cast %191 : vector<4x1x32xf32> to vector<4x32xf32>
    %193 = vector.extract_strided_slice %178 {offsets = [0, 7, 0], sizes = [4, 1, 32], strides = [1, 1, 1]} : vector<4x8x32xf32> to vector<4x1x32xf32>
    %194 = vector.shape_cast %193 : vector<4x1x32xf32> to vector<4x32xf32>
    %195 = tpu.concatenate %180, %182, %184, %186, %188, %190, %192, %194 in 1 : vector<4x32xf32>, vector<4x32xf32>, vector<4x32xf32>, vector<4x32xf32>, vector<4x32xf32>, vector<4x32xf32>, vector<4x32xf32>, vector<4x32xf32> -> vector<4x256xf32>
    %196 = vector.shape_cast %195 : vector<4x256xf32> to vector<1x4x256xf32>
    %c0_105 = arith.constant 0 : index
    %c0_106 = arith.constant 0 : index
    %c0_107 = arith.constant 0 : index
    %197 = vector.load %arg9[%c0_105, %c0_106, %c0_107] : memref<1x4x256xf32, #tpu.memory_space<vmem>>, vector<1x4x256xf32>
    tpu.vector_store %arg9[%c0_105, %c0_106, %c0_107], %196 {strides = array<i32>} : memref<1x4x256xf32, #tpu.memory_space<vmem>>, vector<1x4x256xf32>,
    return
  }
  func.func @transform_0(%arg0: i32, %arg1: i32) -> (i32, i32, i32, i32) {
    %c0_i32 = arith.constant 0 : i32
    %c0_i32_0 = arith.constant 0 : i32
    %c0_i32_1 = arith.constant 0 : i32
    %c0_i32_2 = arith.constant 0 : i32
    return %arg0, %c0_i32, %c0_i32_0, %c0_i32_1 : i32, i32, i32, i32
  }
  func.func @transform_1(%arg0: i32, %arg1: i32) -> (i32, i32, i32, i32) {
    %c0_i32 = arith.constant 0 : i32
    %c0_i32_0 = arith.constant 0 : i32
    %c0_i32_1 = arith.constant 0 : i32
    %c0_i32_2 = arith.constant 0 : i32
    %c0_i32_3 = arith.constant 0 : i32
    return %c0_i32, %c0_i32_0, %c0_i32_1, %c0_i32_2 : i32, i32, i32, i32
  }
  func.func @transform_2(%arg0: i32, %arg1: i32) -> (i32, i32) {
    %c0_i32 = arith.constant 0 : i32
    %c0_i32_0 = arith.constant 0 : i32
    %c0_i32_1 = arith.constant 0 : i32
    return %c0_i32, %c0_i32_0 : i32, i32
  }
  func.func @transform_3(%arg0: i32, %arg1: i32) -> (i32, i32, i32, i32) {
    %c0_i32 = arith.constant 0 : i32
    %c0_i32_0 = arith.constant 0 : i32
    %c0_i32_1 = arith.constant 0 : i32
    %c0_i32_2 = arith.constant 0 : i32
    %c0_i32_3 = arith.constant 0 : i32
    return %c0_i32, %c0_i32_0, %c0_i32_1, %c0_i32_2 : i32, i32, i32, i32
  }
  func.func @transform_4(%arg0: i32, %arg1: i32) -> (i32, i32) {
    %c0_i32 = arith.constant 0 : i32
    %c0_i32_0 = arith.constant 0 : i32
    %c0_i32_1 = arith.constant 0 : i32
    return %c0_i32, %c0_i32_0 : i32, i32
  }
  func.func @transform_5(%arg0: i32, %arg1: i32) -> (i32, i32) {
    %c0_i32 = arith.constant 0 : i32
    %c0_i32_0 = arith.constant 0 : i32
    %c0_i32_1 = arith.constant 0 : i32
    return %c0_i32, %c0_i32_0 : i32, i32
  }
  func.func @transform_6(%arg0: i32, %arg1: i32) -> (i32, i32) {
    %c0_i32 = arith.constant 0 : i32
    %c0_i32_0 = arith.constant 0 : i32
    %c0_i32_1 = arith.constant 0 : i32
    return %c0_i32, %c0_i32_0 : i32, i32
  }
  func.func @transform_7(%arg0: i32, %arg1: i32) -> (i32, i32, i32) {
    %c0_i32 = arith.constant 0 : i32
    %c0_i32_0 = arith.constant 0 : i32
    return %arg0, %arg1, %c0_i32 : i32, i32, i32
  }
}

</mosaic_0001>

<bundles_post_ra>
// kernel: tile.13
= control target key start
LH: loop header
LB: loop body
LE: loop exit
PB: predicated region body
PF: predicated region fallthrough
CT: control target
= control target key end

     0   :  { %s28_s0 = inlined_call_operand.vmem [shape: f32[4], index: 0, kind: input, shape index: {}]   ;;  %s29_s1 = inlined_call_operand.vmem [shape: f32[10,4], index: 1, kind: output, shape index: {}]  }
   0x1   :  { %v4_v0 = vld [vmem:[%s28_s0] ss:$0 sm:$0xff] }
   0x2   :  { %5 = vst [vmem:[%s29_s1] sm:$0xff] %v4_v0  ;;  %8 = vst [vmem:[%s29_s1 + $0x8] sm:$0xff] %v4_v0 }

// kernel: tile.14
= control target key start
LH: loop header
LB: loop body
LE: loop exit
PB: predicated region body
PF: predicated region fallthrough
CT: control target
= control target key end

     0   :  { %s83_s10 = smov 36   ;;  %s84_s11 = smov 28   ;;  %vm3_vm0 = vcmask 31744   ;;  %vm9_vm1 = vcmask 326944   ;;  %vm15_vm2 = vcmask 294144   ;;  %vm21_vm3 = vcmask 261344   ;;  %s135_s0 = inlined_call_operand.vmem [shape: f32[10,4], index: 0, kind: input, shape index: {}]   ;;  %s136_s1 = inlined_call_operand.vmem [shape: f32[1,40], index: 1, kind: output, shape index: {}]  }
   0x1   :  { %v65_v0 = vld [vmem:[%s135_s0 + $0x9] sm:$0x1]   ;;  %v67_v1 = vld [vmem:[%s135_s0 + $0x7] sm:$0x1]   ;;  %v66_v2 = vld [vmem:[%s135_s0 + $0x8] sm:$0x1]  }
   0x2   :  { %7 = vrot.lane.b32.xlu0 %v65_v0, %s83_s10  ;;  %19 = vrot.lane.b32.xlu1 %v67_v1, %s84_s11  ;;  %v68_v3 = vld [vmem:[%s135_s0 + $0x6] sm:$0x1]   ;;  %v2_v4 = vld [vmem:[%s135_s0] sm:$0x1]   ;;  %s85_s18 = smov 32   ;;  %s86_s19 = smov 24  }
   0x3   :  { %v69_v5 = vld [vmem:[%s135_s0 + $0x5] sm:$0x1]   ;;  %v70_v6 = vld [vmem:[%s135_s0 + $0x4] sm:$0x1]   ;;  %4 = vst.msk [vmem:[#allocation0] sm:$0x1] %vm3_vm0, %v2_v4  }
   0x4   :  { %s87_s24 = smov 20   ;;  %s88_s25 = smov 16   ;;  %v71_v7 = vld [vmem:[%s135_s0 + $0x3] sm:$0x1]   ;;  %v72_v8 = vld [vmem:[%s135_s0 + $0x2] sm:$0x1]  }
   0x5   :  { %s89_s30 = smov 12   ;;  %s90_s2 = smov 8   ;;  %v73_v9 = vld [vmem:[%s135_s0 + $0x1] sm:$0x1]   ;;  %vm27_vm4 = vcmask 228544   ;;  %vm33_vm5 = vcmask 195744  }
   0x6   :  { %13 = vrot.lane.b32.xlu0 %v66_v2, %s85_s18  ;;  %25 = vrot.lane.b32.xlu1 %v68_v3, %s86_s19  ;;  %s91_s0 = smov 4   ;;  %vm39_vm6 = vcmask 162944   ;;  %vm45_vm7 = vcmask 130144   ;;  %vm51_vm8 = vcmask 97344   ;;  %vm57_vm9 = vcmask 64544  }
   0xa   :  { %31 = vrot.lane.b32.xlu0 %v69_v5, %s87_s24  ;;  %37 = vrot.lane.b32.xlu1 %v70_v6, %s88_s25 }
   0xe   :  { %43 = vrot.lane.b32.xlu0 %v71_v7, %s89_s30  ;;  %49 = vrot.lane.b32.xlu1 %v72_v8, %s90_s2 }
  0x12   :  { %55 = vrot.lane.b32.xlu0 %v73_v9, %s91_s0 }
  0x74   :  { %v8_v10 = vpop.permute.xlu0 %7   ;;  %v20_v11 = vpop.permute.xlu1 %19  }
  0x75   :  { %10 = vst.msk [vmem:[#allocation0] sm:$0x1] %vm9_vm1, %v8_v10  }
  0x78   :  { %v14_v12 = vpop.permute.xlu0 %13   ;;  %v26_v13 = vpop.permute.xlu1 %25  }
  0x79   :  { %16 = vst.msk [vmem:[#allocation0] sm:$0x1] %vm15_vm2, %v14_v12  }
  0x7a   :  { %22 = vst.msk [vmem:[#allocation0] sm:$0x1] %vm21_vm3, %v20_v11  }
  0x7b   :  { %28 = vst.msk [vmem:[#allocation0] sm:$0x1] %vm27_vm4, %v26_v13  }
  0x7c   :  { %v32_v14 = vpop.permute.xlu0 %31   ;;  %v38_v15 = vpop.permute.xlu1 %37  }
  0x7d   :  { %34 = vst.msk [vmem:[#allocation0] sm:$0x1] %vm33_vm5, %v32_v14  }
  0x7e   :  { %40 = vst.msk [vmem:[#allocation0] sm:$0x1] %vm39_vm6, %v38_v15  }
  0x80   :  { %v44_v16 = vpop.permute.xlu0 %43   ;;  %v50_v17 = vpop.permute.xlu1 %49  }
  0x81   :  { %46 = vst.msk [vmem:[#allocation0] sm:$0x1] %vm45_vm7, %v44_v16  }
  0x82   :  { %52 = vst.msk [vmem:[#allocation0] sm:$0x1] %vm51_vm8, %v50_v17  }
  0x84   :  { %v56_v18 = vpop.permute.xlu0 %55  }
  0x85   :  { %58 = vst.msk [vmem:[#allocation0] sm:$0x1] %vm57_vm9, %v56_v18  }
  0x8c   :  { %v62_v19 = vld [vmem:[#allocation0] sm:$0x1] }
  0x8d   :  { %64 = vst [vmem:[%s136_s1] sm:$0x1] %v62_v19 }

// kernel: tile.18
= control target key start
LH: loop header
LB: loop body
LE: loop exit
PB: predicated region body
PF: predicated region fallthrough
CT: control target
= control target key end

     0   :  { %s22_s0 = inlined_call_operand.vmem [shape: f32[4], index: 0, kind: input, shape index: {}]   ;;  %s23_s1 = inlined_call_operand.vmem [shape: f32[8,4], index: 1, kind: output, shape index: {}]  }
   0x1   :  { %v4_v0 = vld [vmem:[%s22_s0] ss:$0 sm:$0xff] }
   0x2   :  { %5 = vst [vmem:[%s23_s1] sm:$0xff] %v4_v0 }

// kernel: tile.19
= control target key start
LH: loop header
LB: loop body
LE: loop exit
PB: predicated region body
PF: predicated region fallthrough
CT: control target
= control target key end

     0   :  { %s67_s10 = smov 28   ;;  %s68_s11 = smov 20   ;;  %vm3_vm0 = vcmask 31744   ;;  %vm9_vm1 = vcmask 261344   ;;  %vm15_vm2 = vcmask 228544   ;;  %vm21_vm3 = vcmask 195744   ;;  %s111_s0 = inlined_call_operand.vmem [shape: f32[8,4], index: 0, kind: input, shape index: {}]   ;;  %s112_s1 = inlined_call_operand.vmem [shape: f32[1,32], index: 1, kind: output, shape index: {}]  }
   0x1   :  { %v53_v0 = vld [vmem:[%s111_s0 + $0x7] sm:$0x1]   ;;  %v55_v1 = vld [vmem:[%s111_s0 + $0x5] sm:$0x1]   ;;  %v54_v2 = vld [vmem:[%s111_s0 + $0x6] sm:$0x1]  }
   0x2   :  { %7 = vrot.lane.b32.xlu0 %v53_v0, %s67_s10  ;;  %19 = vrot.lane.b32.xlu1 %v55_v1, %s68_s11  ;;  %v56_v3 = vld [vmem:[%s111_s0 + $0x4] sm:$0x1]   ;;  %v2_v4 = vld [vmem:[%s111_s0] sm:$0x1]   ;;  %s69_s18 = smov 24   ;;  %s70_s19 = smov 16  }
   0x3   :  { %4 = vst.msk [vmem:[#allocation0] sm:$0x1] %vm3_vm0, %v2_v4   ;;  %v57_v5 = vld [vmem:[%s111_s0 + $0x3] sm:$0x1]   ;;  %v58_v6 = vld [vmem:[%s111_s0 + $0x2] sm:$0x1]  }
   0x4   :  { %s71_s24 = smov 12   ;;  %s72_s25 = smov 8   ;;  %v59_v7 = vld [vmem:[%s111_s0 + $0x1] sm:$0x1]   ;;  %vm27_vm4 = vcmask 162944   ;;  %vm33_vm5 = vcmask 130144  }
   0x5   :  { %s73_s0 = smov 4   ;;  %vm39_vm6 = vcmask 97344   ;;  %vm45_vm7 = vcmask 64544  }
   0x6   :  { %13 = vrot.lane.b32.xlu0 %v54_v2, %s69_s18  ;;  %25 = vrot.lane.b32.xlu1 %v56_v3, %s70_s19 }
   0xa   :  { %31 = vrot.lane.b32.xlu0 %v57_v5, %s71_s24  ;;  %37 = vrot.lane.b32.xlu1 %v58_v6, %s72_s25 }
   0xe   :  { %43 = vrot.lane.b32.xlu0 %v59_v7, %s73_s0 }
  0x74   :  { %v8_v8 = vpop.permute.xlu0 %7   ;;  %v20_v9 = vpop.permute.xlu1 %19  }
  0x75   :  { %10 = vst.msk [vmem:[#allocation0] sm:$0x1] %vm9_vm1, %v8_v8  }
  0x78   :  { %v14_v10 = vpop.permute.xlu0 %13   ;;  %v26_v11 = vpop.permute.xlu1 %25  }
  0x79   :  { %16 = vst.msk [vmem:[#allocation0] sm:$0x1] %vm15_vm2, %v14_v10  }
  0x7a   :  { %22 = vst.msk [vmem:[#allocation0] sm:$0x1] %vm21_vm3, %v20_v9  }
  0x7b   :  { %28 = vst.msk [vmem:[#allocation0] sm:$0x1] %vm27_vm4, %v26_v11  }
  0x7c   :  { %v32_v12 = vpop.permute.xlu0 %31   ;;  %v38_v13 = vpop.permute.xlu1 %37  }
  0x7d   :  { %34 = vst.msk [vmem:[#allocation0] sm:$0x1] %vm33_vm5, %v32_v12  }
  0x7e   :  { %40 = vst.msk [vmem:[#allocation0] sm:$0x1] %vm39_vm6, %v38_v13  }
  0x80   :  { %v44_v14 = vpop.permute.xlu0 %43  }
  0x81   :  { %46 = vst.msk [vmem:[#allocation0] sm:$0x1] %vm45_vm7, %v44_v14  }
  0x88   :  { %v50_v15 = vld [vmem:[#allocation0] sm:$0x1] }
  0x89   :  { %52 = vst [vmem:[%s112_s1] sm:$0x1] %v50_v15 }

// kernel: sa_module_forward.1
= control target key start
LH: loop header
LB: loop body
LE: loop exit
PB: predicated region body
PF: predicated region fallthrough
CT: control target
= control target key end

     0   :  { %s6153_s24 = smov 0   ;;  %s6155_s25 = smov 0   ;;  %s7721_s0 = inlined_call_operand.vmem [shape: f32[2,4,8,32], index: 0, kind: input, shape index: {}]   ;;  %s7722_s1 = inlined_call_operand.vmem [shape: f32[3,3,48,40], index: 1, kind: input, shape index: {}]   ;;  %s7723_s2 = inlined_call_operand.vmem [shape: f32[1,40], index: 2, kind: input, shape index: {}]   ;;  %s7724_s3 = inlined_call_operand.vmem [shape: f32[3,3,40,32], index: 3, kind: input, shape index: {}]   ;;  %s7725_s4 = inlined_call_operand.vmem [shape: f32[1,32], index: 4, kind: input, shape index: {}]   ;;  %s7726_s5 = inlined_call_operand.vmem [shape: f32[12,48], index: 5, kind: input, shape index: {}]   ;;  %s7727_s6 = inlined_call_operand.vmem [shape: f32[10,40], index: 6, kind: input, shape index: {}]   ;;  %s7728_s7 = inlined_call_operand.vmem [shape: f32[2,4,256], index: 7, kind: output, shape index: {}]  }
   0x1   :  { %s6157_s26 = smov 0  }
   0x2 LB: > { %s29_s27 = sadd.s32 1, %s6099_s25  ;;  %p4982_p0 = scmp.ge.s32.totalorder %s6103_s26, 1  ;;  %s6103_s26 = sphi %s6157_s26, %s17_s26   ;;  %s6099_s25 = sphi %s6155_s25, %s7845_s25   ;;  %s6095_s24 = sphi %s6153_s24, %s7844_s24  }
   0x3   : > { %p31_p1 = scmp.ge.s32.totalorder %s29_s27, 2  ;;  %p251_p2 = scmp.lt.s32.totalorder %s6103_s26, 3 }
   0x5   : > { %s7847_s27 = smov (%p31_p1, %s29_s27), 0  ;;  %p252_p3 = pnand %p4982_p0, %p251_p2 }
   0x7   : > { %255 = sbr.rel (%p252_p3) target bundleno = 1141 (0x475), region = 48 }
   0xe   : > { %p287_p4 = scmp.lt.s32.totalorder %s6095_s24, 1  ;;  %vm308_vm0 = vcmask 455680   ;;  %vm306_vm1 = vcmask 457728   ;;  %v7729_v0 = vmov 0.0   ;;  %s6106_s9 = smov 12   ;;  %vm349_vm2 = vcmask 359520  }
   0xf   : > { %313 = vst.msk [vmem:[#allocation2 + $0x28] sm:$0x3f] %vm308_vm0, %v7729_v0  ;;  %315 = vst.msk [vmem:[#allocation2 + $0x38] sm:$0x3f] %vm308_vm0, %v7729_v0  ;;  %s6107_s10 = smov 124   ;;  %s6108_s11 = smov 120   ;;  %v844_v17 = vlaneseq  ;;  %v840_v28 = vcombine.high %v7729_v0, %v7729_v0 }
  0x10   : > { %317 = vst.msk [vmem:[#allocation2 + $0x48] sm:$0x3f] %vm308_vm0, %v7729_v0  ;;  %319 = vst.msk [vmem:[#allocation2 + $0x58] sm:$0x3f] %vm308_vm0, %v7729_v0  ;;  %s7849_s24 = smov (!%p287_p4, %s6095_s24), 1  ;;  %v984_v22 = vld [vmem:[%s7722_s1] sm:$0xff] }
  0x11   : > { %321 = vst.msk [vmem:[#allocation2 + $0x68] sm:$0x3f] %vm308_vm0, %v7729_v0  ;;  %323 = vst.msk [vmem:[#allocation2 + $0x78] sm:$0x3f] %vm308_vm0, %v7729_v0  ;;  %s5213_s28 = sshll.u32 %s7849_s24, 5  ;;  %v845_v21 = vshrl.u32 %v844_v17, 7 }
  0x12   : > { %312 = vst.msk [vmem:[#allocation2 + $0x20] sm:$0xff] %vm306_vm1, %v7729_v0  ;;  %314 = vst.msk [vmem:[#allocation2 + $0x30] sm:$0xff] %vm306_vm1, %v7729_v0  ;;  %s291_s8 = scalar_lea.vmem %s7721_s0, %s5213_s28  ;;  %v6109_v15 = vmov 1983009808   ;;  %v985_v23 = vld [vmem:[%s7722_s1 + $0x8] sm:$0xff]  ;;  %v986_v29 = vld [vmem:[%s7722_s1 + $0x10] sm:$0xff] }
  0x13   : > { %316 = vst.msk [vmem:[#allocation2 + $0x40] sm:$0xff] %vm306_vm1, %v7729_v0  ;;  %318 = vst.msk [vmem:[#allocation2 + $0x50] sm:$0xff] %vm306_vm1, %v7729_v0  ;;  %v328_v1 = vld [vmem:[%s291_s8] sm:$0xff]  ;;  %v330_v2 = vld [vmem:[%s291_s8 + $0x10] sm:$0xff]  ;;  %v842_v16 = vunpack.c.l.s4 %v6109_v15  ;;  %v5794_v25 = vpack.c.bf16 %v985_v23, %v984_v22  ;;  %vm996_vm3 = vcmask 1040384   ;;  %vm997_vm4 = vcmask 1042434  }
  0x14   : > { %320 = vst.msk [vmem:[#allocation2 + $0x60] sm:$0xff] %vm306_vm1, %v7729_v0  ;;  %322 = vst.msk [vmem:[#allocation2 + $0x70] sm:$0xff] %vm306_vm1, %v7729_v0  ;;  %336 = vrot.lane.b32.xlu0 %v328_v1, %s6106_s9  ;;  %340 = vrot.lane.b32.xlu1 %v330_v2, %s6106_s9  ;;  %v329_v3 = vld [vmem:[%s291_s8 + $0x8] sm:$0xff]  ;;  %v331_v4 = vld [vmem:[%s291_s8 + $0x18] sm:$0xff]  ;;  %vm999_vm6 = vcmask 1044484   ;;  %vm1001_vm8 = vcmask 1046534  }
  0x15   : > { %v843_v20 = vunpack.c.0.s8 %v842_v16  ;;  %5795 = vmatprep.subr.bf16.mxu0 %v5794_v25  ;;  %v987_v30 = vld [vmem:[%s7722_s1 + $0x18] sm:$0xff]  ;;  %v4993_v34 = vld [vmem:[%s7722_s1 + $0x30] sm:$0xff]  ;;  %v988_v39 = vld [vmem:[%s7722_s1 + $0x20] sm:$0xff]  ;;  %v7771_v55 = vmov 0  ;;  %vm1233_vm10 = vcmask 392192   ;;  %vm576_vm11 = vcmask 1046528  }
  0x16   : > { %v6190_v5 = vld [vmem:[#allocation2 + $0x28] sm:$0x3f]  ;;  %5797 = vmatpush3.bf16.msra.mxu0 %v5794_v25  ;;  %v5798_v33 = vpack.c.bf16 %v987_v30, %v986_v29  ;;  %v4994_v35 = vld [vmem:[%s7722_s1 + $0x38] sm:$0xff]  ;;  %v4995_v44 = vld [vmem:[%s7722_s1 + $0x40] sm:$0xff]  ;;  %vm647_vm12 = vcmask 1045504   ;;  %vm3616_vm13 = vcmask 326656  }
  0x17   : > { %v6236_v24 = vsub.s32 %v843_v20, %v845_v21  ;;  %v5782_v36 = vpack.c.bf16 %v4994_v35, %v4993_v34  ;;  %v989_v40 = vld [vmem:[%s7722_s1 + $0x28] sm:$0xff]  ;;  %vm998_vm5 = vmor %vm996_vm3, %vm997_vm4  ;;  %v4997_v59 = vld [vmem:[%s7722_s1 + $0x50] sm:$0xff]  ;;  %vm4806_vm14 = vcmask 1041409   ;;  %vm4811_vm15 = vcmask 1043459   ;;  %s6110_s15 = smov 64   ;;  %s6111_s16 = smov 32  }
  0x18   : > { %338 = vrot.lane.b32.xlu0 %v329_v3, %s6106_s9  ;;  %342 = vrot.lane.b32.xlu1 %v331_v4, %s6106_s9  ;;  %v5802_v43 = vpack.c.bf16 %v989_v40, %v988_v39  ;;  %v4996_v45 = vld [vmem:[%s7722_s1 + $0x48] sm:$0xff]  ;;  %vm1000_vm7 = vmor %vm998_vm5, %vm999_vm6  ;;  %v4998_v60 = vld [vmem:[%s7722_s1 + $0x58] sm:$0xff]  ;;  %s6112_s17 = smov 96   ;;  %vm4879_vm0 = vcmask 261120   ;;  %vm4881_vm1 = vcmask 523264   ;;  %s5214_s18 = sshll.u32 %s7849_s24, 3 }
  0x19   : > { %v6192_v6 = vld [vmem:[#allocation2 + $0x20] sm:$0xff]  ;;  %v6256_v31 = vrot.slane %v7729_v0, %v6236_v24  ;;  %v6259_v32 = vrot.slane %v840_v28, %v6236_v24  ;;  %5799 = vmatprep.subr.bf16.mxu0 %v5798_v33  ;;  %5783 = vmatprep.subr.bf16.mxu1 %v5782_v36  ;;  %v5786_v48 = vpack.c.bf16 %v4996_v45, %v4995_v44  ;;  %vm6319_vm9 = vmor %vm1000_vm7, %vm1001_vm8  ;;  %v6340_v63 = vld [vmem:[#allocation2 + $0x78] sm:$0x3f]  ;;  %s300_s20 = scalar_lea.vmem %s7728_s7, %s5214_s18 }
  0x1a   : > { %5801 = vmatpush3.bf16.msra.mxu0 %v5798_v33  ;;  %5785 = vmatpush3.bf16.msra.mxu1 %v5782_v36  ;;  %v7772_v55 = vsel %vm6319_vm9, 4294967295, %v7771_v55  ;;  %v5790_v2 = vpack.c.bf16 %v4998_v60, %v4997_v59  ;;  %v5015_v34 = vld [vmem:[%s7722_s1 + $0x60] sm:$0xff]  ;;  %v5016_v35 = vld [vmem:[%s7722_s1 + $0x68] sm:$0xff]  ;;  %v5017_v39 = vld [vmem:[%s7722_s1 + $0x70] sm:$0xff] }
  0x1b   : > { %v6273_v37 = vcombine.high %v6256_v31, %v6256_v31  ;;  %v6277_v38 = vcombine.high %v6259_v32, %v6259_v32  ;;  %v1372_v46 = vcombine.low %v6256_v31, %v6256_v31  ;;  %5803 = vmatprep.subr.bf16.mxu0 %v5802_v43  ;;  %v4987_v53 = vrot.slane %v6256_v31, 9  ;;  %5787 = vmatprep.subr.bf16.mxu1 %v5786_v48  ;;  %v6342_v1 = vld [vmem:[#allocation2 + $0x70] sm:$0xff]  ;;  %v5018_v40 = vld [vmem:[%s7722_s1 + $0x78] sm:$0xff]  ;;  %v5019_v45 = vld [vmem:[%s7722_s1 + $0x80] sm:$0xff] }
  0x1c   : > { %406 = vrot.lane.b32.xlu1 %v6190_v5, %s6107_s10  ;;  %404 = vrot.lane.b32.xlu0 %v6192_v6, %s6107_s10  ;;  %7773 = vst [vmem:[#allocation4_spill] sm:$0xff] %v7772_v55  ;;  %v1008_v57 = vrot.slane %v6259_v32, 7  ;;  %v1014_v62 = vrot.slane %v6256_v31, 7  ;;  %v5806_v36 = vpack.c.bf16 %v5016_v35, %v5015_v34  ;;  %v5111_v60 = vld [vmem:[%s7722_s1 + $0x1a0] sm:$0xff] }
  0x1d   : > { %v1355_v41 = vcombine.low %v6256_v31, %v6273_v37  ;;  %v1356_v42 = vcombine.low %v6259_v32, %v6277_v38  ;;  %v1373_v47 = vcombine.low %v6273_v37, %v6259_v32  ;;  %v1380_v51 = vrot.slane %v1372_v46, %v6236_v24  ;;  %v5020_v46 = vld [vmem:[%s7722_s1 + $0x88] sm:$0xff] }
  0x1e   : > { %5805 = vmatpush3.bf16.msra.mxu0 %v5802_v43  ;;  %v1005_v56 = vrot.slane %v6273_v37, 7  ;;  %v1011_v61 = vrot.slane %v6277_v38, 7  ;;  %5789 = vmatpush3.bf16.msra.mxu1 %v5786_v48  ;;  %v5108_v43 = vld [vmem:[%s7722_s1 + $0x188] sm:$0xff]  ;;  %v5814_v48 = vpack.c.bf16 %v5020_v46, %v5019_v45 }
  0x1f   : > { %v6305_v49 = vrot.slane %v1355_v41, %v6236_v24  ;;  %v6308_v50 = vrot.slane %v1356_v42, %v6236_v24  ;;  %v6312_v52 = vrot.slane %v1373_v47, %v6236_v24  ;;  %5791 = vmatprep.subr.bf16.mxu1 %v5790_v2  ;;  %5807 = vmatprep.subr.bf16.mxu0 %v5806_v36  ;;  %v5107_v41 = vld [vmem:[%s7722_s1 + $0x180] sm:$0xff]  ;;  %v5109_v47 = vld [vmem:[%s7722_s1 + $0x190] sm:$0xff] }
  0x20   : > { %486 = vrot.lane.b32.xlu1 %v6190_v5, %s6108_s11  ;;  %484 = vrot.lane.b32.xlu0 %v6192_v6, %s6108_s11  ;;  %v6348_v3 = vsel %vm6319_vm9, %v4987_v53, %v1005_v56  ;;  %v1007_v4 = vrot.slane %v1005_v56, 2  ;;  %v5810_v42 = vpack.c.bf16 %v5018_v40, %v5017_v39  ;;  %v6409_v44 = vpack.c.bf16 %v5108_v43, %v5107_v41 }
  0x21   : > { %7770 = vst [vmem:[#allocation3_spill] sm:$0xff] %v6308_v50  ;;  %v6317_v54 = vcombine.low %v6305_v49, %v6308_v50  ;;  %v6330_v58 = vcombine.low %v1380_v51, %v6312_v52  ;;  %7775 = vst [vmem:[#allocation6_spill] sm:$0xff] %v6348_v3  ;;  %v5110_v51 = vld [vmem:[%s7722_s1 + $0x198] sm:$0xff] }
  0x22   : > { %5793 = vmatpush3.bf16.msra.mxu1 %v5790_v2  ;;  %7780 = vst [vmem:[#allocation11_spill] sm:$0xff] %v6409_v44  ;;  %v6425_v53 = vpack.c.bf16 %v5110_v51, %v5109_v47 }
  0x23   : > { %7774 = vst [vmem:[#allocation5_spill] sm:$0xff] %v6330_v58  ;;  %5458 = vmatprep.mubr.msk.f32.mxu0 %vm1233_vm10, %v6317_v54  ;;  %5962 = vmatprep.subr.bf16.mxu1 %v6409_v44 }
  0x24   : > { %5459 = vmatmul.mubr.msk.f32.vlgmr.msra.gmra.mrb[0].mxu0 %vm1233_vm10, %v6330_v58  ;;  %7781 = vst [vmem:[#allocation12_spill] sm:$0xff] %v6425_v53 }
  0x25   : > { %5809 = vmatpush3.bf16.msra.mxu0 %v5806_v36 }
  0x26   : > { %5811 = vmatprep.subr.bf16.mxu0 %v5810_v42 }
  0x29   : > { %5813 = vmatpush3.bf16.msra.mxu0 %v5810_v42 }
  0x2a   : > { %5815 = vmatprep.subr.bf16.mxu0 %v5814_v48 }
  0x2d   : > { %5817 = vmatpush3.bf16.msra.mxu0 %v5814_v48 }
  0x86   : > { %v337_v7 = vpop.permute.xlu0 %336  ;;  %v341_v8 = vpop.permute.xlu1 %340 }
  0x87   : > { %350 = vst.msk [vmem:[#allocation2 + $0x33] sm:$0xff] %vm349_vm2, %v337_v7  ;;  %352 = vst.msk [vmem:[#allocation2 + $0x53] sm:$0xff] %vm349_vm2, %v341_v8  ;;  %v1010_v7 = vrot.slane %v1008_v57, 2  ;;  %v1013_v8 = vrot.slane %v1011_v61, 2 }
  0x89   : > { %v1012_v15 = vsel %vm6319_vm9, %v1010_v7, %v1011_v61  ;;  %v6362_v16 = vsel %vm6319_vm9, %v1013_v8, %v1014_v62  ;;  %v5112_v61 = vld [vmem:[%s7722_s1 + $0x1a8] sm:$0xff] }
  0x8a   : > { %v339_v9 = vpop.permute.xlu0 %338  ;;  %v343_v10 = vpop.permute.xlu1 %342  ;;  %v1107_v21 = vcombine.low %v1012_v15, %v6362_v16 }
  0x8b   : > { %351 = vst.msk [vmem:[#allocation2 + $0x43] sm:$0xff] %vm349_vm2, %v339_v9  ;;  %353 = vst.msk [vmem:[#allocation2 + $0x63] sm:$0xff] %vm349_vm2, %v343_v10  ;;  %v1016_v9 = vrot.slane %v1014_v62, 2  ;;  %v1009_v10 = vsel %vm6319_vm9, %v1007_v4, %v1008_v57  ;;  %v5033_v57 = vld [vmem:[%s7722_s1 + $0x98] sm:$0xff]  ;;  %v6443_v62 = vpack.c.bf16 %v5112_v61, %v5111_v60  ;;  %vm4883_vm2 = vcmask 785408  }
  0x8c   : > { %v1106_v20 = vcombine.low %v6348_v3, %v1009_v10  ;;  %v1124_v22 = vcombine.low %v1009_v10, %v1012_v15  ;;  %v1121_v28 = vrot.slane %v1107_v21, %v6236_v24 }
  0x8d   : > { %v6366_v17 = vsel %vm6319_vm9, %v1016_v9, %v1005_v56  ;;  %v5032_v56 = vld [vmem:[%s7722_s1 + $0x90] sm:$0xff]  ;;  %7782 = vst [vmem:[#allocation13_spill] sm:$0xff] %v6443_v62 }
  0x8e   : > { %v6202_v11 = vld [vmem:[#allocation2 + $0x38] sm:$0x3f]  ;;  %v6204_v12 = vld [vmem:[#allocation2 + $0x30] sm:$0xff]  ;;  %7776 = vst [vmem:[#allocation7_spill] sm:$0xff] %v6366_v17  ;;  %v1123_v23 = vcombine.low %v6366_v17, %v6348_v3  ;;  %v1114_v25 = vrot.slane %v1106_v20, %v6236_v24  ;;  %v6376_v30 = vrot.slane %v1124_v22, %v6236_v24  ;;  %v6435_v59 = vpack.c.bf16 %v5033_v57, %v5032_v56  ;;  %v407_v2 = vpop.permute.xlu1 %406  ;;  %v405_v4 = vpop.permute.xlu0 %404 }
  0x8f   : > { %410 = vrot.lane.b32.xlu1 %v6202_v11, %s6107_s10  ;;  %408 = vrot.lane.b32.xlu0 %v6204_v12, %s6107_s10  ;;  %v6222_v18 = vld [vmem:[#allocation2 + $0x58] sm:$0x3f]  ;;  %v6224_v19 = vld [vmem:[#allocation2 + $0x50] sm:$0xff]  ;;  %v461_v15 = vadd.f32 %v407_v2, %v6190_v5  ;;  %v460_v20 = vadd.f32 %v405_v4, %v6192_v6 }
  0x90   : > { %v1131_v29 = vrot.slane %v1123_v23, %v6236_v24  ;;  %7777 = vst [vmem:[#allocation8_spill] sm:$0xff] %v6376_v30  ;;  %v6382_v32 = vcombine.low %v1114_v25, %v1121_v28  ;;  %5819 = vmatprep.subr.bf16.mxu0 %v6435_v59 }
  0x92   : > { %v6210_v13 = vld [vmem:[#allocation2 + $0x48] sm:$0x3f]  ;;  %v6212_v14 = vld [vmem:[#allocation2 + $0x40] sm:$0xff]  ;;  %7778 = vst [vmem:[#allocation9_spill] sm:$0xff] %v6382_v32  ;;  %v6385_v33 = vcombine.low %v1131_v29, %v6376_v30  ;;  %5434 = vmatprep.mubr.msk.f32.mxu1 %vm1233_vm10, %v6382_v32  ;;  %v487_v7 = vpop.permute.xlu1 %486  ;;  %v485_v8 = vpop.permute.xlu0 %484 }
  0x93   : > { %414 = vrot.lane.b32.xlu1 %v6210_v13, %s6107_s10  ;;  %412 = vrot.lane.b32.xlu0 %v6212_v14, %s6107_s10  ;;  %v6242_v26 = vld [vmem:[#allocation2 + $0x68] sm:$0x3f]  ;;  %v6244_v27 = vld [vmem:[#allocation2 + $0x60] sm:$0xff]  ;;  %v541_v23 = vadd.f32 %v487_v7, %v461_v15  ;;  %v540_v25 = vadd.f32 %v485_v8, %v460_v20 }
  0x94   : > { %7779 = vst [vmem:[#allocation10_spill] sm:$0xff] %v6385_v33  ;;  %5435 = vmatmul.mubr.msk.f32.vlgmr.msra.gmra.mrb[0].mxu1 %vm1233_vm10, %v6385_v33 }
  0x95   : > { %5965 = vmatpush3.bf16.msra.mxu1 %v6409_v44  ;;  %v584_v40 = vrot.slane %v541_v23, 1  ;;  %v583_v41 = vrot.slane %v540_v25, 1  ;;  %v655_v6 = vrot.slane %v541_v23, 2  ;;  %v654_v46 = vrot.slane %v540_v25, 2 }
  0x96   : > { %5963 = vmatprep.subr.bf16.mxu1 %v6425_v53 }
  0x97   : > { %490 = vrot.lane.b32.xlu1 %v6202_v11, %s6108_s11  ;;  %488 = vrot.lane.b32.xlu0 %v6204_v12, %s6108_s11  ;;  %v585_v48 = vsel %vm576_vm11, %v583_v41, %v584_v40  ;;  %v632_v4 = vadd.f32 %v584_v40, %v541_v23  ;;  %v1389_v41 = vcombine.low %v6277_v38, %v6256_v31 }
  0x98   : > { %v631_v7 = vadd.f32 %v585_v48, %v540_v25 }
  0x99   : > { %5966 = vmatpush3.bf16.msra.mxu1 %v6425_v53 }
  0x9a   : > { %5964 = vmatprep.subr.bf16.mxu1 %v6443_v62 }
  0x9b   : > { %418 = vrot.lane.b32.xlu1 %v6222_v18, %s6107_s10  ;;  %416 = vrot.lane.b32.xlu0 %v6224_v19, %s6107_s10 }
  0x9d   : > { %5967 = vmatpush3.bf16.msra.mxu1 %v6443_v62 }
  0x9f   : > { %494 = vrot.lane.b32.xlu1 %v6210_v13, %s6108_s11  ;;  %492 = vrot.lane.b32.xlu0 %v6212_v14, %s6108_s11 }
  0xa3   : > { %422 = vrot.lane.b32.xlu1 %v6242_v26, %s6107_s10  ;;  %420 = vrot.lane.b32.xlu0 %v6244_v27, %s6107_s10 }
  0xa7   : > { %498 = vrot.lane.b32.xlu1 %v6222_v18, %s6108_s11  ;;  %496 = vrot.lane.b32.xlu0 %v6224_v19, %s6108_s11 }
  0xab   : > { %502 = vrot.lane.b32.xlu1 %v6242_v26, %s6108_s11  ;;  %500 = vrot.lane.b32.xlu0 %v6244_v27, %s6108_s11 }
  0xaf   : > { %426 = vrot.lane.b32.xlu1 %v6340_v63, %s6107_s10  ;;  %424 = vrot.lane.b32.xlu0 %v6342_v1, %s6107_s10 }
  0xb3   : > { %506 = vrot.lane.b32.xlu1 %v6340_v63, %s6108_s11  ;;  %504 = vrot.lane.b32.xlu0 %v6342_v1, %s6108_s11 }
 0x101   : > { %v411_v9 = vpop.permute.xlu1 %410  ;;  %v409_v10 = vpop.permute.xlu0 %408 }
 0x102   : > { %v463_v28 = vadd.f32 %v411_v9, %v6202_v11  ;;  %v462_v29 = vadd.f32 %v409_v10, %v6204_v12  ;;  %v656_v10 = vsel %vm647_vm12, %v654_v46, %v655_v6 }
 0x105   : > { %v415_v21 = vpop.permute.xlu1 %414  ;;  %v413_v22 = vpop.permute.xlu0 %412 }
 0x106   : > { %v465_v56 = vadd.f32 %v415_v21, %v6210_v13  ;;  %v464_v57 = vadd.f32 %v413_v22, %v6212_v14  ;;  %v703_v14 = vadd.f32 %v655_v6, %v632_v4  ;;  %v702_v22 = vadd.f32 %v656_v10, %v631_v7 }
 0x109   : > { %v491_v34 = vpop.permute.xlu1 %490  ;;  %v489_v35 = vpop.permute.xlu0 %488 }
 0x10a   : > { %v543_v36 = vadd.f32 %v491_v34, %v463_v28  ;;  %v542_v39 = vadd.f32 %v489_v35, %v462_v29 }
 0x10c   : > { %v587_v42 = vrot.slane %v543_v36, 1  ;;  %v586_v43 = vrot.slane %v542_v39, 1  ;;  %v658_v51 = vrot.slane %v543_v36, 2  ;;  %v657_v12 = vrot.slane %v542_v39, 2 }
 0x10d   : > { %v419_v5 = vpop.permute.xlu1 %418  ;;  %v417_v45 = vpop.permute.xlu0 %416 }
 0x10e   : > { %v588_v47 = vsel %vm576_vm11, %v586_v43, %v587_v42  ;;  %v634_v11 = vadd.f32 %v587_v42, %v543_v36  ;;  %v659_v20 = vsel %vm647_vm12, %v657_v12, %v658_v51  ;;  %v467_v25 = vadd.f32 %v419_v5, %v6222_v18 }
 0x10f   : > { %v633_v60 = vadd.f32 %v588_v47, %v542_v39  ;;  %v1140_v42 = vcombine.low %v6362_v16, %v6366_v17  ;;  %v466_v46 = vadd.f32 %v417_v45, %v6224_v19  ;;  %v1635_v18 = vrot.slane %v6273_v37, %v6236_v24  ;;  %v6477_v19 = vld [vmem:[%s7726_s5] sm:$0xff] }
 0x110   : > { %v705_v15 = vadd.f32 %v658_v51, %v634_v11 }
 0x111   : > { %v495_v61 = vpop.permute.xlu1 %494  ;;  %v493_v2 = vpop.permute.xlu0 %492  ;;  %v704_v36 = vadd.f32 %v659_v20, %v633_v60  ;;  %v6469_v60 = vrot.slane %v1389_v41, %v6236_v24  ;;  %v6472_v16 = vrot.slane %v1140_v42, %v6236_v24  ;;  %v6482_v20 = vcombine.low %v1635_v18, %v6308_v50 }
 0x112   : > { %v545_v8 = vadd.f32 %v495_v61, %v465_v56  ;;  %v544_v9 = vadd.f32 %v493_v2, %v464_v57  ;;  %v723_v43 = vadd.f32 %v705_v15, %v703_v14 }
 0x113   : > { %v722_v6 = vadd.f32 %v704_v36, %v702_v22  ;;  %7783 = vst [vmem:[#allocation14_spill] sm:$0xff] %v6469_v60  ;;  %7784 = vst [vmem:[#allocation15_spill] sm:$0xff] %v6472_v16 }
 0x114   : > { %v590_v28 = vrot.slane %v545_v8, 1  ;;  %v661_v29 = vrot.slane %v545_v8, 2  ;;  %v589_v34 = vrot.slane %v544_v9, 1  ;;  %v660_v35 = vrot.slane %v544_v9, 2 }
 0x115   : > { %v423_v13 = vpop.permute.xlu1 %422  ;;  %v421_v21 = vpop.permute.xlu0 %420 }
 0x116   : > { %v636_v39 = vadd.f32 %v590_v28, %v545_v8  ;;  %v591_v23 = vsel %vm576_vm11, %v589_v34, %v590_v28  ;;  %v662_v48 = vsel %vm647_vm12, %v660_v35, %v661_v29  ;;  %v469_v45 = vadd.f32 %v423_v13, %v6242_v26  ;;  %v6488_v26 = vld [vmem:[%s7726_s5 + $0x8] sm:$0xf] }
 0x117   : > { %v635_v40 = vadd.f32 %v591_v23, %v544_v9  ;;  %v468_v7 = vadd.f32 %v421_v21, %v6244_v27 }
 0x118   : > { %v707_v47 = vadd.f32 %v661_v29, %v636_v39 }
 0x119   : > { %v706_v11 = vadd.f32 %v662_v48, %v635_v40  ;;  %v499_v51 = vpop.permute.xlu1 %498  ;;  %v497_v12 = vpop.permute.xlu0 %496 }
 0x11a   : > { %v739_v5 = vadd.f32 %v723_v43, %v707_v47  ;;  %v547_v56 = vadd.f32 %v499_v51, %v467_v25  ;;  %v546_v57 = vadd.f32 %v497_v12, %v466_v46  ;;  %v725_v13 = vadd.f32 %v707_v47, %v705_v15 }
 0x11b   : > { %v738_v38 = vadd.f32 %v722_v6, %v706_v11  ;;  %v724_v40 = vadd.f32 %v706_v11, %v704_v36 }
 0x11c   : > { %v593_v61 = vrot.slane %v547_v56, 1  ;;  %v664_v2 = vrot.slane %v547_v56, 2  ;;  %v592_v37 = vrot.slane %v546_v57, 1  ;;  %v663_v8 = vrot.slane %v546_v57, 2 }
 0x11d   : > { %v754_v4 = vmul.f32 0.037037037, %v738_v38  ;;  %v503_v9 = vpop.permute.xlu1 %502  ;;  %v501_v10 = vpop.permute.xlu0 %500  ;;  %v755_v28 = vmul.f32 0.037037037, %v739_v5 }
 0x11e   : > { %v638_v29 = vadd.f32 %v593_v61, %v547_v56  ;;  %v594_v34 = vsel %vm576_vm11, %v592_v37, %v593_v61  ;;  %v549_v35 = vadd.f32 %v503_v9, %v469_v45  ;;  %v548_v21 = vadd.f32 %v501_v10, %v468_v7 }
 0x11f   : > { %v800_v14 = vmul.f32 %v6477_v19, %v754_v4  ;;  %v637_v27 = vadd.f32 %v594_v34, %v546_v57  ;;  %v665_v39 = vsel %vm647_vm12, %v663_v8, %v664_v2  ;;  %v801_v6 = vmul.f32 %v6488_v26, %v755_v28 }
 0x120   : > { %v709_v22 = vadd.f32 %v664_v2, %v638_v29  ;;  %v596_v23 = vrot.slane %v549_v35, 1  ;;  %v667_v25 = vrot.slane %v549_v35, 2  ;;  %v595_v43 = vrot.slane %v548_v21, 1 }
 0x121   : > { %v6493_v41 = vrot.slane %v800_v14, %v6236_v24  ;;  %v708_v42 = vadd.f32 %v665_v39, %v637_v27  ;;  %v427_v46 = vpop.permute.xlu1 %426  ;;  %v425_v48 = vpop.permute.xlu0 %424  ;;  %v666_v12 = vrot.slane %v548_v21, 2  ;;  %v888_v18 = vcombine.high %v800_v14, %v800_v14 }
 0x122   : > { %v741_v15 = vadd.f32 %v725_v13, %v709_v22  ;;  %v640_v51 = vadd.f32 %v596_v23, %v549_v35  ;;  %v727_v56 = vadd.f32 %v709_v22, %v707_v47  ;;  %v597_v57 = vsel %vm576_vm11, %v595_v43, %v596_v23 }
 0x123   : > { %v740_v5 = vadd.f32 %v724_v40, %v708_v42  ;;  %v639_v36 = vadd.f32 %v597_v57, %v548_v21  ;;  %v668_v61 = vsel %vm647_vm12, %v666_v12, %v667_v25  ;;  %v471_v37 = vadd.f32 %v427_v46, %v6340_v63 }
 0x124   : > { %v757_v38 = vmul.f32 0.037037037, %v741_v15  ;;  %v711_v45 = vadd.f32 %v667_v25, %v640_v51  ;;  %v470_v4 = vadd.f32 %v425_v48, %v6342_v1  ;;  %v6502_v9 = vcombine.high %v6493_v41, %v6493_v41 }
 0x125   : > { %v756_v2 = vmul.f32 0.037037037, %v740_v5  ;;  %v507_v7 = vpop.permute.xlu1 %506  ;;  %v505_v8 = vpop.permute.xlu0 %504  ;;  %v726_v28 = vadd.f32 %v708_v42, %v706_v11  ;;  %v710_v29 = vadd.f32 %v668_v61, %v639_v36  ;;  %v6509_v1 = vrot.slane %v801_v6, %v6236_v24 }
 0x126   : > { %v803_v47 = vmul.f32 %v6488_v26, %v757_v38  ;;  %v743_v10 = vadd.f32 %v727_v56, %v711_v45  ;;  %v551_v35 = vadd.f32 %v507_v7, %v471_v37  ;;  %v550_v13 = vadd.f32 %v505_v8, %v470_v4 }
 0x127   : > { %v802_v34 = vmul.f32 %v6477_v19, %v756_v2  ;;  %v1390_v63 = vcombine.low %v6493_v41, %v6502_v9  ;;  %v742_v27 = vadd.f32 %v726_v28, %v710_v29  ;;  %v6513_v21 = vcombine.low %v6312_v52, %v6469_v60 }
 0x128   : > { %v759_v14 = vmul.f32 0.037037037, %v743_v10  ;;  %v6516_v39 = vrot.slane %v888_v18, %v6236_v24  ;;  %v729_v23 = vadd.f32 %v711_v45, %v709_v22  ;;  %v599_v25 = vrot.slane %v551_v35, 1 }
 0x129   : > { %v912_v11 = vcombine.high %v802_v34, %v802_v34  ;;  %v758_v40 = vmul.f32 0.037037037, %v742_v27  ;;  %v670_v43 = vrot.slane %v551_v35, 2  ;;  %v598_v46 = vrot.slane %v550_v13, 1 }
 0x12a   : > { %v669_v48 = vrot.slane %v550_v13, 2  ;;  %v6519_v15 = vrot.slane %v803_v47, %v6236_v24  ;;  %v728_v6 = vadd.f32 %v710_v29, %v708_v42  ;;  %v642_v51 = vadd.f32 %v599_v25, %v551_v35 }
 0x12b   : > { %v6522_v12 = vrot.slane %v1390_v63, %v6236_v24  ;;  %v6525_v5 = vrot.slane %v802_v34, %v6236_v24  ;;  %v6528_v18 = vrot.slane %v912_v11, %v6236_v24  ;;  %v805_v22 = vmul.f32 %v6488_v26, %v759_v14 }
 0x12c   : > { %v600_v56 = vsel %vm576_vm11, %v598_v46, %v599_v25  ;;  %v713_v57 = vadd.f32 %v670_v43, %v642_v51  ;;  %v1037_v42 = vrot.slane %v6502_v9, 7  ;;  %v804_v36 = vmul.f32 %v6477_v19, %v758_v40 }
 0x12d   : > { %v641_v38 = vadd.f32 %v600_v56, %v550_v13  ;;  %v1405_v45 = vcombine.low %v6469_v60, %v6522_v12  ;;  %v671_v61 = vsel %vm647_vm12, %v669_v48, %v670_v43  ;;  %v4989_v2 = vrot.slane %v6493_v41, 9 }
 0x12e   : > { %v6540_v37 = vcombine.high %v6516_v39, %v6516_v39  ;;  %v745_v4 = vadd.f32 %v729_v23, %v713_v57  ;;  %v1039_v8 = vrot.slane %v1037_v42, 2  ;;  %v1040_v47 = vrot.slane %v6516_v39, 7 }
 0x12f   : > { %v712_v7 = vadd.f32 %v671_v61, %v641_v38  ;;  %5461 = vmatprep.mubr.msk.f32.mxu0 %vm1233_vm10, %v1405_v45  ;;  %v6545_v10 = vrot.slane %v805_v22, %v6236_v24  ;;  %v6549_v28 = vsel %vm6319_vm9, %v4989_v2, %v1037_v42  ;;  %v6553_v29 = vcombine.high %v6525_v5, %v6525_v5 }
 0x130   : > { %7785 = vst [vmem:[#allocation16_spill] sm:$0xff] %v6549_v28  ;;  %v1406_v34 = vcombine.low %v6516_v39, %v6540_v37  ;;  %v761_v35 = vmul.f32 0.037037037, %v745_v4  ;;  %v6559_v63 = vsel %vm6319_vm9, %v1039_v8, %v1040_v47  ;;  %v1407_v14 = vcombine.low %v6509_v1, %v6525_v5 }
 0x131   : > { %v744_v13 = vadd.f32 %v728_v6, %v712_v7  ;;  %v936_v27 = vcombine.high %v804_v36, %v804_v36  ;;  %v1141_v11 = vcombine.low %v6549_v28, %v6559_v63  ;;  %v1423_v25 = vcombine.low %v6553_v29, %v6528_v18  ;;  %v5036_v28 = vld [vmem:[%s7722_s1 + $0xb0] sm:$0xff] }
 0x132   : > { %v6566_v23 = vrot.slane %v1406_v34, %v6236_v24  ;;  %v807_v40 = vmul.f32 %v6488_v26, %v761_v35  ;;  %v6572_v46 = vrot.slane %v1407_v14, %v6236_v24  ;;  %v5067_v48 = vcombine.high %v6256_v31, %v6493_v41 }
 0x133   : > { %v760_v43 = vmul.f32 0.037037037, %v744_v13  ;;  %v6577_v6 = vrot.slane %v1141_v11, %v6236_v24  ;;  %v6580_v51 = vrot.slane %v1423_v25, %v6236_v24  ;;  %v6584_v22 = vcombine.high %v6528_v18, %v6528_v18 }
 0x134   : > { %7786 = vst [vmem:[#allocation17_spill] sm:$0xff] %v6572_v46  ;;  %v6588_v26 = vcombine.high %v6509_v1, %v6509_v1  ;;  %v6591_v56 = vrot.slane %v804_v36, %v6236_v24  ;;  %v1422_v38 = vcombine.low %v6566_v23, %v6572_v46  ;;  %v6597_v45 = vrot.slane %v5067_v48, %v6236_v24 }
 0x135   : > { %v806_v57 = vmul.f32 %v6477_v19, %v760_v43  ;;  %v6600_v42 = vrot.slane %v936_v27, %v6236_v24  ;;  %v1156_v61 = vcombine.low %v6472_v16, %v6577_v6  ;;  %v1424_v36 = vcombine.low %v6584_v22, %v6519_v15 }
 0x136   : > { %7787 = vst [vmem:[#allocation18_spill] sm:$0xff] %v6597_v45  ;;  %5462 = vmatmul.mubr.msk.f32.gmra.mrb[2].mxu0 %vm1233_vm10, %v1422_v38  ;;  %v1042_v7 = vrot.slane %v1040_v47, 2  ;;  %v1043_v8 = vrot.slane %v6540_v37, 7  ;;  %v6613_v34 = vrot.slane %v807_v40, %v6236_v24  ;;  %v1046_v13 = vrot.slane %v6509_v1, 7 }
 0x137   : > { %v960_v4 = vcombine.high %v806_v57, %v806_v57  ;;  %5437 = vmatprep.mubr.msk.f32.mxu1 %vm1233_vm10, %v1156_v61  ;;  %v6617_v35 = vrot.slane %v1424_v36, %v6236_v24  ;;  %v1049_v14 = vrot.slane %v6588_v26, 7  ;;  %v6622_v27 = vrot.slane %v806_v57, %v6236_v24 }
 0x138   : > { %v1045_v11 = vrot.slane %v1043_v8, 2  ;;  %v4990_v47 = vrot.slane %v6525_v5, 9  ;;  %v1053_v25 = vrot.slane %v6553_v29, 7  ;;  %v1048_v48 = vrot.slane %v1046_v13, 2 }
 0x139   : > { %v6627_v40 = vrot.slane %v960_v4, %v6236_v24  ;;  %v1439_v43 = vcombine.low %v6580_v51, %v6617_v35  ;;  %v6633_v38 = vcombine.high %v6591_v56, %v6591_v56  ;;  %v6637_v57 = vsel %vm6319_vm9, %v1042_v7, %v1043_v8 }
 0x13a   : > { %v6641_v61 = vsel %vm6319_vm9, %v1045_v11, %v1046_v13  ;;  %v6645_v36 = vsel %vm6319_vm9, %v4990_v47, %v1053_v25  ;;  %v6649_v4 = vcombine.high %v6600_v42, %v6600_v42  ;;  %v6654_v0 = vsel %vm6319_vm9, %v1048_v48, %v1049_v14 }
 0x13b   : > { %7788 = vst [vmem:[#allocation19_spill] sm:$0xff] %v6641_v61  ;;  %5464 = vmatprep.mubr.msk.f32.mxu0 %vm1233_vm10, %v1439_v43  ;;  %7789 = vst [vmem:[#allocation20_spill] sm:$0xff] %v6654_v0  ;;  %v1157_v7 = vcombine.low %v6637_v57, %v6641_v61  ;;  %v1440_v8 = vcombine.low %v6591_v56, %v6633_v38  ;;  %v6662_v13 = vcombine.high %v6519_v15, %v6519_v15 }
 0x13c   : > { %v1158_v11 = vcombine.low %v6654_v0, %v6645_v36  ;;  %v1441_v47 = vcombine.low %v6600_v42, %v6649_v4  ;;  %v1055_v43 = vrot.slane %v1053_v25, 2  ;;  %v1056_v14 = vrot.slane %v6528_v18, 7 }
 0x13d   : > { %v6670_v48 = vrot.slane %v1157_v7, %v6236_v24  ;;  %v6673_v2 = vrot.slane %v1440_v8, %v6236_v24  ;;  %v1059_v19 = vrot.slane %v6584_v22, 7  ;;  %v1062_v33 = vrot.slane %v6519_v15, 7 }
 0x13e   : > { %v6678_v62 = vrot.slane %v1158_v11, %v6236_v24  ;;  %v6681_v53 = vrot.slane %v1441_v47, %v6236_v24  ;;  %v6685_v25 = vsel %vm6319_vm9, %v1055_v43, %v1056_v14  ;;  %v1058_v44 = vrot.slane %v1056_v14, 2 }
 0x13f   : > { %v1061_v7 = vrot.slane %v1059_v19, 2  ;;  %v1064_v58 = vrot.slane %v1062_v33, 2  ;;  %v1065_v8 = vrot.slane %v6662_v13, 7  ;;  %v4991_v46 = vrot.slane %v6591_v56, 9 }
 0x140   : > { %7790 = vst [vmem:[#allocation21_spill] sm:$0xff] %v6678_v62  ;;  %v1173_v50 = vcombine.low %v6670_v48, %v6678_v62  ;;  %v1456_v11 = vcombine.low %v6673_v2, %v6681_v53  ;;  %v6695_v47 = vsel %vm6319_vm9, %v1058_v44, %v1059_v19  ;;  %v1069_v43 = vrot.slane %v6633_v38, 7 }
 0x141   : > { %7791 = vst [vmem:[#allocation22_spill] sm:$0xff] %v6695_v47  ;;  %v6700_v14 = vsel %vm6319_vm9, %v1061_v7, %v1062_v33  ;;  %v6704_v45 = vsel %vm6319_vm9, %v1064_v58, %v1065_v8  ;;  %v1174_v16 = vcombine.low %v6685_v25, %v6695_v47  ;;  %v1072_v30 = vrot.slane %v6600_v42, 7 }
 0x142   : > { %7792 = vst [vmem:[#allocation23_spill] sm:$0xff] %v6700_v14  ;;  %7793 = vst [vmem:[#allocation24_spill] sm:$0xff] %v6704_v45  ;;  %5438 = vmatmul.mubr.msk.f32.gmra.mrb[2].mxu1 %vm1233_vm10, %v1173_v50  ;;  %5465 = vmatmul.mubr.msk.f32.gmra.mrb[4].mxu0 %vm1233_vm10, %v1456_v11  ;;  %v1175_v44 = vcombine.low %v6700_v14, %v6704_v45  ;;  %v6715_v33 = vsel %vm6319_vm9, %v4991_v46, %v1069_v43  ;;  %v1071_v19 = vrot.slane %v1069_v43, 2 }
 0x143   : > { %7794 = vst [vmem:[#allocation25_spill] sm:$0xff] %v6715_v33  ;;  %v1075_v58 = vrot.slane %v6649_v4, 7  ;;  %v6719_v7 = vrot.slane %v1174_v16, %v6236_v24  ;;  %v1074_v8 = vrot.slane %v1072_v30, 2  ;;  %v1078_v3 = vrot.slane %v6545_v10, 7 }
 0x144   : > { %v6724_v50 = vcombine.high %v6622_v27, %v6622_v27  ;;  %v6727_v11 = vrot.slane %v1175_v44, %v6236_v24  ;;  %v6731_v46 = vsel %vm6319_vm9, %v1071_v19, %v1072_v30  ;;  %v1457_v32 = vcombine.low %v6545_v10, %v6622_v27 }
 0x145   : > { %7795 = vst [vmem:[#allocation26_spill] sm:$0xff] %v6719_v7  ;;  %7796 = vst [vmem:[#allocation27_spill] sm:$0xff] %v6731_v46  ;;  %v1077_v43 = vrot.slane %v1075_v58, 2  ;;  %v6739_v60 = vsel %vm6319_vm9, %v1074_v8, %v1075_v58  ;;  %v1191_v45 = vcombine.low %v6715_v33, %v6731_v46  ;;  %v6756_v58 = vcombine.high %v6627_v40, %v6627_v40 }
 0x146   : > { %7797 = vst [vmem:[#allocation28_spill] sm:$0xff] %v6739_v60  ;;  %v1458_v44 = vcombine.low %v6724_v50, %v6627_v40  ;;  %v1190_v30 = vcombine.low %v6719_v7, %v6727_v11  ;;  %v6752_v47 = vrot.slane %v1457_v32, %v6236_v24  ;;  %v1080_v7 = vrot.slane %v1078_v3, 2 }
 0x147   : > { %v6749_v19 = vsel %vm6319_vm9, %v1077_v43, %v1078_v3  ;;  %v6761_v16 = vrot.slane %v1191_v45, %v6236_v24  ;;  %v6768_v43 = vcombine.high %v6545_v10, %v6545_v10  ;;  %v1474_v32 = vcombine.low %v6756_v58, %v6613_v34 }
 0x148   : > { %7798 = vst [vmem:[#allocation29_spill] sm:$0xff] %v6749_v19  ;;  %v1192_v8 = vcombine.low %v6739_v60, %v6749_v19  ;;  %v6764_v62 = vrot.slane %v1458_v44, %v6236_v24  ;;  %5440 = vmatprep.mubr.msk.f32.mxu1 %vm1233_vm10, %v1190_v30  ;;  %v4992_v46 = vrot.slane %v6622_v27, 9  ;;  %v1085_v60 = vrot.slane %v6724_v50, 7 }
 0x149   : > { %7800 = vst [vmem:[#allocation31_spill] sm:$0xff] %v6768_v43  ;;  %v1081_v19 = vrot.slane %v6768_v43, 7  ;;  %v1088_v33 = vrot.slane %v6627_v40, 7  ;;  %v6783_v30 = vrot.slane %v1474_v32, %v6236_v24  ;;  %v1091_v61 = vrot.slane %v6756_v58, 7 }
 0x14a   : > { %7799 = vst [vmem:[#allocation30_spill] sm:$0xff] %v6764_v62  ;;  %v6776_v45 = vrot.slane %v1192_v8, %v6236_v24  ;;  %v1473_v44 = vcombine.low %v6752_v47, %v6764_v62  ;;  %v6787_v3 = vsel %vm6319_vm9, %v4992_v46, %v1085_v60  ;;  %v1087_v14 = vrot.slane %v1085_v60, 2  ;;  %v5034_v46 = vld [vmem:[%s7722_s1 + $0xa0] sm:$0xff]  ;;  %v5035_v60 = vld [vmem:[%s7722_s1 + $0xa8] sm:$0xff] }
 0x14b   : > { %7801 = vst [vmem:[#allocation32_spill] sm:$0xff] %v6783_v30  ;;  %7802 = vst [vmem:[#allocation33_spill] sm:$0xff] %v6787_v3  ;;  %v6795_v62 = vsel %vm6319_vm9, %v1080_v7, %v1081_v19  ;;  %v1090_v43 = vrot.slane %v1088_v33, 2  ;;  %v995_v32 = vcombine.high %v6613_v34, %v6613_v34  ;;  %v1093_v19 = vrot.slane %v1091_v61, 2 }
 0x14c   : > { %v1207_v8 = vcombine.low %v6761_v16, %v6776_v45  ;;  %5467 = vmatprep.mubr.msk.f32.mxu0 %vm1233_vm10, %v1473_v44  ;;  %7803 = vst [vmem:[#allocation34_spill] sm:$0xff] %v6795_v62  ;;  %v6809_v44 = vsel %vm6319_vm9, %v1087_v14, %v1088_v33  ;;  %v1208_v7 = vcombine.low %v6795_v62, %v6787_v3  ;;  %v1094_v0 = vrot.slane %v6613_v34, 7 }
 0x14d   : > { %5468 = vmatmul.mubr.msk.f32.gmra.mrb[6].mxu0 %vm1233_vm10, %v6783_v30  ;;  %v6819_v17 = vsel %vm6319_vm9, %v1090_v43, %v1091_v61  ;;  %v1097_v30 = vrot.slane %v995_v32, 7  ;;  %v1645_v14 = vcombine.low %v6502_v9, %v6516_v39  ;;  %v5037_v61 = vld [vmem:[%s7722_s1 + $0xb8] sm:$0xff]  ;;  %v1679_v39 = vcombine.low %v6519_v15, %v6662_v13 }
 0x14e   : > { %5441 = vmatmul.mubr.msk.f32.gmra.mrb[4].mxu1 %vm1233_vm10, %v1207_v8  ;;  %5482 = vmatprep.mubr.msk.f32.mxu0 %vm1233_vm10, %v6513_v21  ;;  %v1209_v33 = vcombine.low %v6809_v44, %v6819_v17  ;;  %v6827_v3 = vsel %vm6319_vm9, %v1093_v19, %v1094_v0  ;;  %v1096_v62 = vrot.slane %v1094_v0, 2  ;;  %v5822_v8 = vpack.c.bf16 %v5035_v60, %v5034_v46 }
 0x14f   : > { %v6836_v43 = vrot.slane %v1208_v7, %v6236_v24  ;;  %v6839_v9 = vrot.slane %v1645_v14, %v6236_v24  ;;  %v1695_v0 = vcombine.low %v6633_v38, %v6600_v42  ;;  %v1661_v7 = vcombine.low %v6540_v37, %v6509_v1 }
 0x150   : > { %v6846_v46 = vrot.slane %v1209_v33, %v6236_v24  ;;  %v6852_v60 = vsel %vm6319_vm9, %v1096_v62, %v1097_v30  ;;  %v5022_v19 = vcombine.high %v6509_v1, %v6525_v5  ;;  %v1693_v38 = vrot.slane %v1679_v39, %v6236_v24 }
 0x151   : > { %5483 = vmatmul.mubr.msk.f32.vlgmr.msra.gmra.mrb[8].mxu0 %vm1233_vm10, %v6482_v20  ;;  %v1225_v13 = vcombine.low %v6827_v3, %v6852_v60  ;;  %v1660_v42 = vcombine.low %v6305_v49, %v6839_v9  ;;  %v5826_v14 = vpack.c.bf16 %v5037_v61, %v5036_v28  ;;  %v1703_v30 = vrot.slane %v1695_v0, %v6236_v24 }
 0x152   : > { %5821 = vmatpush3.bf16.msra.mxu0 %v6435_v59  ;;  %v1224_v62 = vcombine.low %v6836_v43, %v6846_v46  ;;  %v6868_v37 = vrot.slane %v1661_v7, %v6236_v24  ;;  %v6871_v33 = vrot.slane %v5022_v19, %v6236_v24  ;;  %v1678_v59 = vcombine.low %v6528_v18, %v6584_v22 }
 0x153   : > { %5823 = vmatprep.subr.bf16.mxu0 %v5822_v8  ;;  %v6874_v55 = vrot.slane %v1225_v13, %v6236_v24  ;;  %5485 = vmatprep.mubr.msk.f32.mxu0 %vm1233_vm10, %v1660_v42  ;;  %v1696_v28 = vcombine.low %v6649_v4, %v6545_v10  ;;  %v5023_v61 = vcombine.high %v6545_v10, %v6622_v27  ;;  %v5047_v13 = vld [vmem:[%s7722_s1 + $0xc0] sm:$0xff] }
 0x154   : > { %5443 = vmatprep.mubr.msk.f32.mxu1 %vm1233_vm10, %v1224_v62  ;;  %v2982_v39 = vcombine.low %v1693_v38, %v1703_v30  ;;  %v1677_v0 = vcombine.low %v6868_v37, %v6871_v33  ;;  %v1713_v7 = vcombine.low %v6627_v40, %v6756_v58  ;;  %v1729_v19 = vcombine.low %v6613_v34, %v995_v32  ;;  %v5048_v40 = vld [vmem:[%s7722_s1 + $0xc8] sm:$0xff] }
 0x155   : > { %5444 = vmatmul.mubr.msk.f32.gmra.mrb[6].mxu1 %vm1233_vm10, %v6874_v55  ;;  %v6892_v18 = vrot.slane %v1678_v59, %v6236_v24  ;;  %v1710_v22 = vrot.slane %v1696_v28, %v6236_v24  ;;  %v1720_v4 = vrot.slane %v5023_v61, %v6236_v24  ;;  %v5830_v61 = vpack.c.bf16 %v5048_v40, %v5047_v13 }
 0x156   : > { %5825 = vmatpush3.bf16.msra.mxu0 %v5822_v8  ;;  %5629 = vmatprep.mubr.msk.f32.mxu1 %vm1233_vm10, %v2982_v39  ;;  %v6905_v58 = vrot.slane %v1713_v7, %v6236_v24  ;;  %v1736_v32 = vrot.slane %v1729_v19, %v6236_v24  ;;  %v1908_v7 = vcombine.low %v6256_v31, %v6493_v41  ;;  %v5050_v41 = vld [vmem:[%s7722_s1 + $0xd8] sm:$0xff] }
 0x157   : > { %5486 = vmatmul.mubr.msk.f32.gmra.mrb[2].mxu0 %vm1233_vm10, %v1677_v0  ;;  %v1694_v42 = vcombine.low %v6892_v18, %v1693_v38  ;;  %v2983_v62 = vcombine.low %v1710_v22, %v1720_v4  ;;  %5827 = vmatprep.subr.bf16.mxu0 %v5826_v14  ;;  %v1711_v28 = vcombine.low %v1703_v30, %v1710_v22 }
 0x158   : > { %v2984_v59 = vcombine.low %v6905_v58, %v1736_v32  ;;  %v1728_v39 = vcombine.low %v1720_v4, %v6905_v58  ;;  %v1917_v0 = vcombine.low %v6525_v5, %v6553_v29  ;;  %v1926_v38 = vcombine.low %v6519_v15, %v6591_v56  ;;  %v5049_v5 = vld [vmem:[%s7722_s1 + $0xd0] sm:$0xff] }
 0x159   : > { %5488 = vmatprep.mubr.msk.f32.mxu0 %vm1233_vm10, %v1694_v42  ;;  %5630 = vmatmul.mubr.msk.f32.vlgmr.msra.gmra.mrb[8].mxu1 %vm1233_vm10, %v2983_v62  ;;  %v1915_v29 = vrot.slane %v1908_v7, %v6236_v24  ;;  %v5834_v22 = vpack.c.bf16 %v5050_v41, %v5049_v5  ;;  %v2393_v4 = vcombine.low %v6509_v1, %v6588_v26  ;;  %v5052_v42 = vld [vmem:[%s7722_s1 + $0xe8] sm:$0xff] }
 0x15a   : > { %5632 = vmatprep.mubr.msk.f32.mxu1 %vm1233_vm10, %v2984_v59  ;;  %5829 = vmatpush3.bf16.msra.mxu0 %v5826_v14  ;;  %v1924_v30 = vrot.slane %v1917_v0, %v6236_v24  ;;  %v1933_v19 = vrot.slane %v1926_v38, %v6236_v24  ;;  %v1944_v40 = vcombine.low %v6613_v34, %v6256_v31 }
 0x15b   : > { %5489 = vmatmul.mubr.msk.f32.gmra.mrb[4].mxu0 %vm1233_vm10, %v1711_v28  ;;  %5831 = vmatprep.subr.bf16.mxu0 %v5830_v61  ;;  %v1916_v14 = vcombine.low %v1915_v29, %v6839_v9  ;;  %v5068_v62 = vcombine.high %v6519_v15, %v6591_v56  ;;  %v6960_v1 = vrot.slane %v2393_v4, %v6236_v24 }
 0x15c   : > { %5491 = vmatprep.mubr.msk.f32.mxu0 %vm1233_vm10, %v1728_v39  ;;  %v1925_v13 = vcombine.low %v6868_v37, %v1924_v30  ;;  %v1934_v59 = vcombine.low %v6892_v18, %v1933_v19  ;;  %v2608_v39 = vcombine.low %v6522_v12, %v6566_v23  ;;  %v2610_v7 = vcombine.low %v6617_v35, %v6673_v2  ;;  %v7830_v12 = vld [vmem:[#allocation5_spill] sm:$0xff] }
 0x15d   : > { %5633 = vmatmul.mubr.msk.f32.gmra.mrb[10].mxu1 %vm1233_vm10, %v6513_v21  ;;  %v6964_v26 = vrot.slane %v5068_v62, %v6236_v24  ;;  %v2401_v56 = vcombine.low %v6960_v1, %v6580_v51  ;;  %v2611_v38 = vcombine.low %v6681_v53, %v6752_v47  ;;  %v2797_v5 = vcombine.low %v6577_v6, %v6670_v48  ;;  %v7825_v1 = vld [vmem:[#allocation32_spill] sm:$0xff]  ;;  %v7838_v48 = vld [vmem:[#allocation13_spill] sm:$0xff]  ;;  %v7839_v47 = vld [vmem:[#allocation10_spill] sm:$0xff] }
 0x15e   : > { %5635 = vmatprep.mubr.msk.f32.mxu1 %vm1233_vm10, %v6482_v20  ;;  %v1935_v20 = vcombine.low %v6622_v27, %v6724_v50  ;;  %v1952_v27 = vrot.slane %v1944_v40, %v6236_v24  ;;  %v5061_v50 = vld [vmem:[%s7722_s1 + $0xf0] sm:$0xff]  ;;  %v2799_v41 = vcombine.low %v6727_v11, %v6761_v16  ;;  %v2138_v4 = vcombine.low %v6559_v63, %v6637_v57 }
 0x15f   : > { %5492 = vmatmul.mubr.msk.f32.gmra.mrb[10].mxu0 %vm1233_vm10, %v1736_v32  ;;  %v5051_v32 = vld [vmem:[%s7722_s1 + $0xe0] sm:$0xff]  ;;  %v2410_v0 = vcombine.low %v6617_v35, %v6964_v26  ;;  %v7836_v35 = vcombine.low %v6776_v45, %v6836_v43  ;;  %v7837_v6 = vcombine.low %v6846_v46, %v6874_v55  ;;  %v7840_v55 = vcombine.low %v6839_v9, %v6868_v37  ;;  %v5128_v37 = vld [vmem:[%s7724_s3 + $0x28] sm:$0xff] }
 0x160   : > { %5506 = vmatprep.mubr.msk.f32.mxu0 %vm1233_vm10, %v6317_v54  ;;  %v5838_v15 = vpack.c.bf16 %v5052_v42, %v5051_v32  ;;  %v1942_v30 = vrot.slane %v1935_v20, %v6236_v24  ;;  %v1960_v32 = vcombine.low %v1952_v27, %v6312_v52  ;;  %v7805_v42 = vld [vmem:[#allocation7_spill] sm:$0xff]  ;;  %v7806_v20 = vld [vmem:[#allocation20_spill] sm:$0xff]  ;;  %v2152_v57 = vrot.slane %v2138_v4, %v6236_v24  ;;  %v7810_v27 = vld [vmem:[#allocation25_spill] sm:$0xff] }
 0x161   : > { %5636 = vmatmul.mubr.msk.f32.gmra.mrb[12].mxu1 %vm1233_vm10, %v6305_v49  ;;  %v5095_v26 = vld [vmem:[%s7722_s1 + $0x160] sm:$0xff]  ;;  %v7841_v11 = vcombine.low %v6871_v33, %v6892_v18  ;;  %v5129_v33 = vld [vmem:[%s7724_s3 + $0x30] sm:$0xff]  ;;  %v5130_v18 = vld [vmem:[%s7724_s3 + $0x38] sm:$0xff] }
 0x163   : > { %5507 = vmatmul.mubr.msk.f32.vlgmr.msra.gmra.mrb[12].mxu0 %vm1233_vm10, %v1916_v14  ;;  %v7818_v14 = vld [vmem:[#allocation6_spill] sm:$0xff] }
 0x164   : > { %5509 = vmatprep.mubr.msk.f32.mxu0 %vm1233_vm10, %v1925_v13  ;;  %5833 = vmatpush3.bf16.msra.mxu0 %v5830_v61  ;;  %v5062_v61 = vld [vmem:[%s7722_s1 + $0xf8] sm:$0xff]  ;;  %v1943_v13 = vcombine.low %v1942_v30, %v6905_v58  ;;  %v7808_v58 = vld [vmem:[#allocation23_spill] sm:$0xff]  ;;  %v2222_v29 = vcombine.low %v6852_v60, %v7818_v14 }
 0x165   : > { %5835 = vmatprep.subr.bf16.mxu0 %v5834_v22  ;;  %v5842_v40 = vpack.c.bf16 %v5062_v61, %v5061_v50  ;;  %v7809_v50 = vld [vmem:[#allocation22_spill] sm:$0xff]  ;;  %v7811_v61 = vld [vmem:[#allocation24_spill] sm:$0xff] }
 0x166   : > { %v2171_v52 = vcombine.low %v7809_v50, %v7808_v58  ;;  %v7816_v58 = vld [vmem:[#allocation28_spill] sm:$0xff]  ;;  %v7817_v50 = vld [vmem:[#allocation27_spill] sm:$0xff] }
 0x167   : > { %5510 = vmatmul.mubr.msk.f32.gmra.mrb[2].mxu0 %vm1233_vm10, %v1934_v59  ;;  %v7807_v59 = vld [vmem:[#allocation19_spill] sm:$0xff] }
 0x168   : > { %5512 = vmatprep.mubr.msk.f32.mxu0 %vm1233_vm10, %v1711_v28  ;;  %5837 = vmatpush3.bf16.msra.mxu0 %v5834_v22  ;;  %v2155_v28 = vcombine.low %v6645_v36, %v6685_v25  ;;  %v7804_v22 = vld [vmem:[#allocation16_spill] sm:$0xff]  ;;  %v2154_v63 = vcombine.low %v7807_v59, %v7806_v20  ;;  %v2172_v36 = vcombine.low %v7811_v61, %v7810_v27  ;;  %v5063_v25 = vld [vmem:[%s7722_s1 + $0x100] sm:$0xff]  ;;  %v7815_v20 = vld [vmem:[#allocation9_spill] sm:$0xff] }
 0x169   : > { %5839 = vmatprep.subr.bf16.mxu0 %v5838_v15  ;;  %v2137_v62 = vcombine.low %v7805_v42, %v7804_v22  ;;  %v7814_v42 = vld [vmem:[#allocation14_spill] sm:$0xff]  ;;  %v2188_v27 = vcombine.low %v7817_v50, %v7816_v58  ;;  %v7821_v58 = vld [vmem:[#allocation15_spill] sm:$0xff] }
 0x16a   : > { %v2169_v30 = vrot.slane %v2155_v28, %v6236_v24  ;;  %v2162_v59 = vrot.slane %v2154_v63, %v6236_v24  ;;  %v2179_v28 = vrot.slane %v2171_v52, %v6236_v24  ;;  %v2186_v19 = vrot.slane %v2172_v36, %v6236_v24  ;;  %v5065_v63 = vld [vmem:[%s7722_s1 + $0x110] sm:$0xff]  ;;  %v7822_v50 = vld [vmem:[#allocation31_spill] sm:$0xff] }
 0x16b   : > { %5513 = vmatmul.mubr.msk.f32.gmra.mrb[4].mxu0 %vm1233_vm10, %v1943_v13  ;;  %v7812_v13 = vld [vmem:[#allocation34_spill] sm:$0xff]  ;;  %v2145_v22 = vrot.slane %v2137_v62, %v6236_v24  ;;  %v2206_v62 = vcombine.low %v6819_v17, %v6827_v3  ;;  %v7819_v52 = vld [vmem:[#allocation33_spill] sm:$0xff]  ;;  %v2196_v17 = vrot.slane %v2188_v27, %v6236_v24  ;;  %v2411_v27 = vcombine.low %v6545_v10, %v7822_v50 }
 0x16c   : > { %5515 = vmatprep.mubr.msk.f32.mxu0 %vm1233_vm10, %v1960_v32  ;;  %5841 = vmatpush3.bf16.msra.mxu0 %v5838_v15  ;;  %v5064_v15 = vld [vmem:[%s7722_s1 + $0x108] sm:$0xff]  ;;  %v7813_v32 = vld [vmem:[#allocation29_spill] sm:$0xff]  ;;  %v2205_v36 = vcombine.low %v7819_v52, %v6809_v44  ;;  %v2187_v3 = vcombine.low %v2179_v28, %v2186_v19  ;;  %v5142_v50 = vld [vmem:[%s7724_s3 + $0x58] sm:$0xff] }
 0x16d   : > { %5843 = vmatprep.subr.bf16.mxu0 %v5842_v40  ;;  %v2189_v4 = vcombine.low %v7813_v32, %v7812_v13  ;;  %v5846_v61 = vpack.c.bf16 %v5064_v15, %v5063_v25  ;;  %v2153_v8 = vcombine.low %v2145_v22, %v2152_v57  ;;  %v2170_v13 = vcombine.low %v2162_v59, %v2169_v30  ;;  %v5066_v57 = vld [vmem:[%s7722_s1 + $0x118] sm:$0xff]  ;;  %v5079_v44 = vld [vmem:[%s7722_s1 + $0x128] sm:$0xff]  ;;  %v5080_v22 = vld [vmem:[%s7722_s1 + $0x130] sm:$0xff] }
 0x16e   : > { %v2220_v60 = vrot.slane %v2206_v62, %v6236_v24  ;;  %v5850_v14 = vpack.c.bf16 %v5066_v57, %v5065_v63  ;;  %v2230_v15 = vrot.slane %v2222_v29, %v6236_v24  ;;  %v5081_v59 = vld [vmem:[%s7722_s1 + $0x138] sm:$0xff]  ;;  %v5083_v63 = vld [vmem:[%s7722_s1 + $0x148] sm:$0xff] }
 0x16f   : > { %5516 = vmatmul.mubr.msk.f32.gmra.mrb[14].mxu0 %vm1233_vm10, %v7814_v42  ;;  %v2203_v32 = vrot.slane %v2189_v4, %v6236_v24  ;;  %v7820_v4 = vld [vmem:[#allocation8_spill] sm:$0xff]  ;;  %v5858_v28 = vpack.c.bf16 %v5081_v59, %v5080_v22  ;;  %v7823_v57 = vld [vmem:[#allocation18_spill] sm:$0xff]  ;;  %v5890_v22 = vpack.c.bf16 %v5129_v33, %v5128_v37  ;;  %v5131_v59 = vld [vmem:[%s7724_s3 + $0x40] sm:$0xff] }
 0x170   : > { %5530 = vmatprep.mubr.msk.f32.mxu0 %vm1233_vm10, %v7815_v20  ;;  %v2238_v29 = vcombine.low %v2230_v15, %v7820_v4  ;;  %v5436_v15 = vpop.f32.mrb[0].mxu1  ;;  %v7828_v4 = vld [vmem:[#allocation17_spill] sm:$0xff] }
 0x171   : > { %v2204_v25 = vcombine.low %v2196_v17, %v2203_v32  ;;  %v5082_v32 = vld [vmem:[%s7722_s1 + $0x140] sm:$0xff]  ;;  %v5094_v17 = vld [vmem:[%s7722_s1 + $0x158] sm:$0xff]  ;;  %5891 = vmatprep.subr.bf16.mxu1 %v5890_v22 }
 0x172   : > { %v5862_v10 = vpack.c.bf16 %v5083_v63, %v5082_v32  ;;  %5893 = vmatpush3.bf16.msra.mxu1 %v5890_v22 }
 0x173   : > { %5531 = vmatmul.mubr.msk.f32.vlgmr.msra.gmra.mrb[16].mxu0 %vm1233_vm10, %v2153_v8  ;;  %v5078_v8 = vld [vmem:[%s7722_s1 + $0x120] sm:$0xff] }
 0x174   : > { %5533 = vmatprep.mubr.msk.f32.mxu0 %vm1233_vm10, %v2170_v13  ;;  %5845 = vmatpush3.bf16.msra.mxu0 %v5842_v40  ;;  %v2213_v40 = vrot.slane %v2205_v36, %v6236_v24  ;;  %v5854_v30 = vpack.c.bf16 %v5079_v44, %v5078_v8  ;;  %v5069_v13 = vcombine.high %v6613_v34, %v6256_v31  ;;  %v5093_v36 = vld [vmem:[%s7722_s1 + $0x150] sm:$0xff]  ;;  %v1316_v44 = vpop.f32.mrb[1].mxu1 }
 0x175   : > { %5847 = vmatprep.subr.bf16.mxu0 %v5846_v61  ;;  %v2418_v31 = vrot.slane %v2411_v27, %v6236_v24 }
 0x176   : > { %v2221_v19 = vcombine.low %v2213_v40, %v2220_v60  ;;  %v2429_v52 = vrot.slane %v5069_v13, %v6236_v24  ;;  %v5866_v60 = vpack.c.bf16 %v5094_v17, %v5093_v36 }
 0x177   : > { %5534 = vmatmul.mubr.msk.f32.gmra.mrb[2].mxu0 %vm1233_vm10, %v2187_v3  ;;  %v2419_v34 = vcombine.low %v6681_v53, %v2418_v31  ;;  %v7832_v53 = vld [vmem:[#allocation21_spill] sm:$0xff]  ;;  %v3465_v31 = vld [vmem:[%s7724_s3] sm:$0xff] }
 0x178   : > { %5536 = vmatprep.mubr.msk.f32.mxu0 %vm1233_vm10, %v2204_v25  ;;  %5849 = vmatpush3.bf16.msra.mxu0 %v5846_v61  ;;  %v5460_v61 = vpop.f32.mrb[0].mxu0 }
 0x179   : > { %5851 = vmatprep.subr.bf16.mxu0 %v5850_v14  ;;  %v1564_v62 = vpop.f32.mrb[1].mxu0  ;;  %v1570_v8 = vadd.f32 %v5460_v61, %v5436_v15 }
 0x17b   : > { %5537 = vmatmul.mubr.msk.f32.gmra.mrb[4].mxu0 %vm1233_vm10, %v2221_v19  ;;  %v5097_v19 = vld [vmem:[%s7722_s1 + $0x170] sm:$0xff] }
 0x17c   : > { %5539 = vmatprep.mubr.msk.f32.mxu0 %vm1233_vm10, %v2238_v29  ;;  %5853 = vmatpush3.bf16.msra.mxu0 %v5850_v14  ;;  %v7827_v14 = vld [vmem:[#allocation3_spill] sm:$0xff]  ;;  %v7829_v29 = vcombine.low %v7828_v4, %v6580_v51  ;;  %v7833_v51 = vld [vmem:[#allocation26_spill] sm:$0xff] }
 0x17d   : > { %5855 = vmatprep.subr.bf16.mxu0 %v5854_v30  ;;  %v2437_v25 = vcombine.low %v2429_v52, %v7827_v14  ;;  %v7834_v2 = vcombine.low %v7832_v53, %v7833_v51 }
 0x17f   : > { %5540 = vmatmul.mubr.msk.f32.gmra.mrb[18].mxu0 %vm1233_vm10, %v7821_v58 }
 0x180   : > { %5554 = vmatprep.mubr.msk.f32.mxu0 %vm1233_vm10, %v6513_v21  ;;  %v7824_v21 = vcombine.low %v7823_v57, %v6566_v23  ;;  %v7831_v23 = vld [vmem:[#allocation11_spill] sm:$0xff] }
 0x183   : > { %5555 = vmatmul.mubr.msk.f32.vlgmr.msra.gmra.mrb[20].mxu0 %vm1233_vm10, %v7824_v21  ;;  %v5132_v21 = vld [vmem:[%s7724_s3 + $0x48] sm:$0xff] }
 0x184   : > { %5557 = vmatprep.mubr.msk.f32.mxu0 %vm1233_vm10, %v2401_v56  ;;  %5857 = vmatpush3.bf16.msra.mxu0 %v5854_v30  ;;  %v7826_v56 = vld [vmem:[#allocation30_spill] sm:$0xff] }
 0x185   : > { %5859 = vmatprep.subr.bf16.mxu0 %v5858_v28  ;;  %v2420_v3 = vcombine.low %v7826_v56, %v7825_v1  ;;  %v5098_v30 = vld [vmem:[%s7722_s1 + $0x178] sm:$0xff] }
 0x187   : > { %5558 = vmatmul.mubr.msk.f32.gmra.mrb[2].mxu0 %vm1233_vm10, %v2410_v0  ;;  %v5096_v0 = vld [vmem:[%s7722_s1 + $0x168] sm:$0xff] }
 0x188   : > { %5560 = vmatprep.mubr.msk.f32.mxu0 %vm1233_vm10, %v2419_v34  ;;  %5861 = vmatpush3.bf16.msra.mxu0 %v5858_v28  ;;  %v5870_v40 = vpack.c.bf16 %v5096_v0, %v5095_v26 }
 0x189   : > { %5863 = vmatprep.subr.bf16.mxu0 %v5862_v10 }
 0x18b   : > { %5561 = vmatmul.mubr.msk.f32.gmra.mrb[4].mxu0 %vm1233_vm10, %v2420_v3 }
 0x18c   : > { %5563 = vmatprep.mubr.msk.f32.mxu0 %vm1233_vm10, %v2437_v25  ;;  %5865 = vmatpush3.bf16.msra.mxu0 %v5862_v10  ;;  %v3466_v10 = vld [vmem:[%s7724_s3 + $0x8] sm:$0xff] }
 0x18d   : > { %5867 = vmatprep.subr.bf16.mxu0 %v5866_v60  ;;  %v7226_v56 = vpack.c.bf16 %v3466_v10, %v3465_v31 }
 0x18f   : > { %5564 = vmatmul.mubr.msk.f32.gmra.mrb[22].mxu0 %vm1233_vm10, %v6305_v49  ;;  %v5874_v49 = vpack.c.bf16 %v5098_v30, %v5097_v19 }
 0x190   : > { %5578 = vmatprep.mubr.msk.f32.mxu0 %vm1233_vm10, %v2608_v39 }
 0x193   : > { %5579 = vmatmul.mubr.msk.f32.vlgmr.msra.gmra.mrb[24].mxu0 %vm1233_vm10, %v7829_v29 }
 0x194   : > { %5581 = vmatprep.mubr.msk.f32.mxu0 %vm1233_vm10, %v2610_v7  ;;  %5869 = vmatpush3.bf16.msra.mxu0 %v5866_v60 }
 0x195   : > { %5871 = vmatprep.subr.bf16.mxu0 %v5870_v40 }
 0x197   : > { %5582 = vmatmul.mubr.msk.f32.gmra.mrb[2].mxu0 %vm1233_vm10, %v2611_v38 }
 0x198   : > { %5584 = vmatprep.mubr.msk.f32.mxu0 %vm1233_vm10, %v2420_v3  ;;  %5873 = vmatpush3.bf16.msra.mxu0 %v5870_v40 }
 0x199   : > { %5875 = vmatprep.subr.bf16.mxu0 %v5874_v49 }
 0x19b   : > { %5585 = vmatmul.mubr.msk.f32.gmra.mrb[4].mxu0 %vm1233_vm10, %v6317_v54  ;;  %v7835_v54 = vld [vmem:[#allocation12_spill] sm:$0xff] }
 0x19c   : > { %5587 = vmatprep.mubr.msk.f32.mxu0 %vm1233_vm10, %v7830_v12  ;;  %5877 = vmatpush3.bf16.msra.mxu0 %v5874_v49 }
 0x19d   : > { %5879 = vmatprep.subr.bf16.mxu0 %v7831_v23 }
 0x19f   : > { %5588 = vmatmul.mubr.msk.f32.gmra.mrb[26].mxu0 %vm1233_vm10, %v7814_v42 }
 0x1a0   : > { %5602 = vmatprep.mubr.msk.f32.mxu0 %vm1233_vm10, %v2797_v5 }
 0x1a3   : > { %5603 = vmatmul.mubr.msk.f32.vlgmr.msra.gmra.mrb[28].mxu0 %vm1233_vm10, %v7834_v2 }
 0x1a4   : > { %5605 = vmatprep.mubr.msk.f32.mxu0 %vm1233_vm10, %v2799_v41  ;;  %5881 = vmatpush3.bf16.msra.mxu0 %v7831_v23  ;;  %v7842_v41 = vmov 0.0  }
 0x1a5   : > { %5883 = vmatprep.subr.bf16.mxu0 %v7835_v54  ;;  %v5124_v42 = vrot.slane %v7842_v41, 9 }
 0x1a7   : > { %5606 = vmatmul.mubr.msk.f32.gmra.mrb[2].mxu0 %vm1233_vm10, %v7836_v35 }
 0x1a8   : > { %5608 = vmatprep.mubr.msk.f32.mxu0 %vm1233_vm10, %v7837_v6  ;;  %5885 = vmatpush3.bf16.msra.mxu0 %v7835_v54 }
 0x1a9   : > { %5887 = vmatprep.subr.bf16.mxu0 %v7838_v48 }
 0x1ab   : > { %5609 = vmatmul.mubr.msk.f32.gmra.mrb[4].mxu0 %vm1233_vm10, %v7815_v20  ;;  %v3492_v20 = vrot.slane %v7842_v41, 7 }
 0x1ac   : > { %5611 = vmatprep.mubr.msk.f32.mxu0 %vm1233_vm10, %v7839_v47  ;;  %5889 = vmatpush3.bf16.msra.mxu0 %v7838_v48 }
 0x1ad   : > { %v3493_v27 = vsel %vm6319_vm9, %v5124_v42, %v3492_v20  ;;  %v3494_v61 = vrot.slane %v3492_v20, 2 }
 0x1af   : > { %5612 = vmatmul.mubr.msk.f32.gmra.mrb[30].mxu0 %vm1233_vm10, %v7821_v58  ;;  %v5894_v58 = vpack.c.bf16 %v5131_v59, %v5130_v18  ;;  %v3496_v13 = vsel %vm6319_vm9, %v3494_v61, %v3492_v20  ;;  %v3372_v18 = vld [vmem:[%s7727_s6] sm:$0xff] }
 0x1b0   : > { %5626 = vmatprep.mubr.msk.f32.mxu0 %vm1233_vm10, %v7840_v55  ;;  %v3548_v63 = vcombine.low %v3493_v27, %v3496_v13  ;;  %v3549_v57 = vcombine.low %v3496_v13, %v3496_v13  ;;  %v3376_v20 = vcombine.high %v3372_v18, %v3372_v18 }
 0x1b1   : > { %5895 = vmatprep.subr.bf16.mxu1 %v5894_v58 }
 0x1b2   : > { %v3556_v52 = vrot.slane %v3548_v63, %v6236_v24  ;;  %v3563_v36 = vrot.slane %v3549_v57, %v6236_v24  ;;  %5897 = vmatpush3.bf16.msra.mxu1 %v5894_v58  ;;  %v7244_v58 = vld [vmem:[%s7723_s2] ss:$0 sm:$0xff] }
 0x1b3   : > { %5627 = vmatmul.mubr.msk.f32.vlgmr.msra.gmra.mrb[32].mxu0 %vm1233_vm10, %v7841_v11  ;;  %5646 = vmatprep.subr.mxu1 %v5132_v21 }
 0x1b4   : > { %v7224_v1 = vcombine.low %v3556_v52, %v3563_v36 }
 0x1b6   : > { %5648 = vmatprep.mubr.msk.f32.mxu1 %vm3616_vm13, %v7224_v1  ;;  %5647 = vmatpush3.msra.mxu1 %v5132_v21 }
 0x1b7   : > { %5899 = vmatprep.subr.bf16.mxu1 %v7226_v56 }
 0x215   : > { %v7187_v16 = vpop.f32.mrb[2].mxu1 }
 0x216   : > { %v7189_v45 = vpop.f32.mrb[3].mxu1 }
 0x220   : > { %v5469_v43 = vpop.f32.mrb[6].mxu0 }
 0x221   : > { %v7191_v46 = vpop.f32.mrb[4].mxu1  ;;  %v1594_v39 = vpop.f32.mrb[7].mxu0 }
 0x222   : > { %v7193_v7 = vpop.f32.mrb[5].mxu1 }
 0x224   : > { %v5484_v38 = vpop.f32.mrb[8].mxu0 }
 0x225   : > { %v1859_v5 = vadd.f32 %v5484_v38, %v1570_v8  ;;  %v1819_v9 = vpop.f32.mrb[9].mxu0 }
 0x228   : > { %v5445_v28 = vpop.f32.mrb[6].mxu1 }
 0x229   : > { %v1346_v62 = vpop.f32.mrb[7].mxu1  ;;  %v7248_v28 = vrot.slane %v3376_v20, %v6236_v24 }
 0x22a   : > { %v1595_v32 = vadd.f32 %v1594_v39, %v1346_v62 }
 0x22c   : > { %v5631_v34 = vpop.f32.mrb[8].mxu1 }
 0x22d   : > { %v3103_v17 = vpop.f32.mrb[9].mxu1 }
 0x230   : > { %v5634_v3 = vpop.f32.mrb[10].mxu1 }
 0x231   : > { %v3113_v14 = vpop.f32.mrb[11].mxu1 }
 0x232   : > { %v5493_v60 = vpop.f32.mrb[10].mxu0 }
 0x233   : > { %v1849_v25 = vpop.f32.mrb[11].mxu0 }
 0x234   : > { %v1864_v15 = vadd.f32 %v1849_v25, %v1595_v32  ;;  %v5637_v8 = vpop.f32.mrb[12].mxu1 }
 0x235   : > { %v7231_v26 = vpop.f32.mrb[13].mxu1 }
 0x236   : > { %v5508_v44 = vpop.f32.mrb[12].mxu0 }
 0x237   : > { %v2089_v0 = vadd.f32 %v5508_v44, %v1859_v5  ;;  %v2049_v40 = vpop.f32.mrb[13].mxu0  ;;  %v7265_v44 = vrot.slane %v3372_v18, %v6236_v24 }
 0x242   : > { %v5517_v19 = vpop.f32.mrb[14].mxu0 }
 0x243   : > { %v2079_v30 = vpop.f32.mrb[15].mxu0 }
 0x244   : > { %v2094_v4 = vadd.f32 %v2079_v30, %v1864_v15 }
 0x246   : > { %v5532_v29 = vpop.f32.mrb[16].mxu0 }
 0x247   : > { %v2369_v49 = vadd.f32 %v5532_v29, %v2089_v0  ;;  %v2329_v12 = vpop.f32.mrb[17].mxu0 }
 0x252   : > { %v5541_v23 = vpop.f32.mrb[18].mxu0 }
 0x253   : > { %v2359_v53 = vpop.f32.mrb[19].mxu0 }
 0x254   : > { %v2374_v51 = vadd.f32 %v2359_v53, %v2094_v4  ;;  %v7276_v4 = vld.sshfl [vmem:[%s7727_s6 + $0x8] sm:$0x3 pattern:$0x76325410] }
 0x256   : > { %v5556_v2 = vpop.f32.mrb[20].mxu0 }
 0x257   : > { %v2568_v54 = vadd.f32 %v5556_v2, %v2369_v49  ;;  %v2528_v35 = vpop.f32.mrb[21].mxu0 }
 0x262   : > { %v5565_v6 = vpop.f32.mrb[22].mxu0 }
 0x263   : > { %v2558_v48 = vpop.f32.mrb[23].mxu0  ;;  %v7286_v6 = vcombine.high %v7265_v44, %v7265_v44 }
 0x264   : > { %v2573_v47 = vadd.f32 %v2558_v48, %v2374_v51 }
 0x266   : > { %v5580_v55 = vpop.f32.mrb[24].mxu0 }
 0x267   : > { %v2766_v11 = vadd.f32 %v5580_v55, %v2568_v54  ;;  %v2726_v43 = vpop.f32.mrb[25].mxu0 }
 0x272   : > { %v5589_v39 = vpop.f32.mrb[26].mxu0 }
 0x273   : > { %v2756_v38 = vpop.f32.mrb[27].mxu0 }
 0x274   : > { %v7233_v5 = vadd.f32 %v2756_v38, %v2573_v47  ;;  %v7296_v38 = vcombine.low %v7842_v41, %v7842_v41 }
 0x276   : > { %v5604_v9 = vpop.f32.mrb[28].mxu0 }
 0x277   : > { %v7235_v37 = vadd.f32 %v5604_v9, %v2766_v11  ;;  %v2926_v33 = vpop.f32.mrb[29].mxu0 }
 0x27a   : > { %v5607_v42 = vpop.f32.mrb[2].mxu0 }
 0x27b   : > { %v5968_v22 = vadd.f32 %v5607_v42, %v7187_v16  ;;  %v2936_v59 = vpop.f32.mrb[3].mxu0 }
 0x27c   : > { %v5970_v27 = vadd.f32 %v2936_v59, %v7189_v45  ;;  %v7257_v45 = vcombine.high %v7248_v28, %v7248_v28 }
 0x27d   : > { %v5969_v61 = vadd.f32 %v5968_v22, %v5631_v34 }
 0x27e   : > { %v5971_v62 = vadd.f32 %v5970_v27, %v3103_v17  ;;  %v5610_v13 = vpop.f32.mrb[4].mxu0 }
 0x27f   : > { %v3150_v32 = vadd.f32 %v5969_v61, %v7244_v58  ;;  %v5972_v63 = vadd.f32 %v5610_v13, %v7191_v46  ;;  %v2946_v57 = vpop.f32.mrb[5].mxu0 }
 0x280   : > { %v3149_v16 = vadd.f32 %v5971_v62, %v7244_v58  ;;  %v5974_v21 = vadd.f32 %v2946_v57, %v7193_v7 }
 0x281   : > { %v3214_v31 = vcombine.high %v3150_v32, %v3150_v32  ;;  %v3221_v10 = vrot.slane %v3150_v32, %v6236_v24  ;;  %v5973_v52 = vadd.f32 %v5972_v63, %v5634_v3 }
 0x282   : > { %v3197_v34 = vcombine.high %v3149_v16, %v3149_v16  ;;  %v3204_v36 = vrot.slane %v3149_v16, %v6236_v24  ;;  %v5975_v17 = vadd.f32 %v5974_v21, %v3113_v14  ;;  %v5613_v60 = vpop.f32.mrb[30].mxu0 }
 0x283   : > { %v7261_v46 = vrot.slane %v3214_v31, %v6236_v24  ;;  %v3229_v25 = vcombine.high %v3221_v10, %v3221_v10  ;;  %v3332_v15 = vmax.f32 %v3221_v10, 0.0  ;;  %v3152_v7 = vadd.f32 %v5973_v52, %v7244_v58  ;;  %v2956_v8 = vpop.f32.mrb[31].mxu0 }
 0x284   : > { %v3211_v3 = vrot.slane %v3197_v34, %v6236_v24  ;;  %v3212_v0 = vcombine.high %v3204_v36, %v3204_v36  ;;  %v3328_v40 = vmax.f32 %v3204_v36, 0.0  ;;  %v3151_v55 = vadd.f32 %v5975_v17, %v7244_v58 }
 0x285   : > { %v3230_v19 = vcombine.high %v7261_v46, %v7261_v46  ;;  %v3333_v14 = vmax.f32 %v3229_v25, 0.0  ;;  %v7271_v30 = vmul.f32 %v7248_v28, %v3332_v15  ;;  %v3248_v54 = vcombine.high %v3152_v7, %v3152_v7 }
 0x286   : > { %v3213_v29 = vcombine.high %v3211_v3, %v3211_v3  ;;  %v3329_v49 = vmax.f32 %v3212_v0, 0.0  ;;  %v3330_v12 = vmax.f32 %v3211_v3, 0.0  ;;  %v7279_v23 = vmul.f32 %v7257_v45, %v3328_v40  ;;  %v5628_v53 = vpop.f32.mrb[32].mxu0 }
 0x287   : > { %v3335_v51 = vmax.f32 %v3230_v19, 0.0  ;;  %v7282_v2 = vmul.f32 %v7257_v45, %v3333_v14  ;;  %v3093_v35 = vpop.f32.mrb[33].mxu0  ;;  %v3334_v11 = vmax.f32 %v7261_v46, 0.0  ;;  %v3255_v43 = vrot.slane %v3152_v7, %v6236_v24 }
 0x288   : > { %v3414_v48 = vmul.f32 %v7276_v4, %v3329_v49  ;;  %v3511_v47 = vrot.slane %v7279_v23, 7  ;;  %v3262_v39 = vrot.slane %v3248_v54, %v6236_v24  ;;  %v3521_v33 = vrot.slane %v7271_v30, 7 }
 0x289   : > { %v7299_v9 = vmul.f32 %v7265_v44, %v3335_v51  ;;  %v3331_v18 = vmax.f32 %v3213_v29, 0.0  ;;  %v7303_v42 = vmul.f32 %v7265_v44, %v3330_v12  ;;  %v3524_v20 = vrot.slane %v7282_v2, 7 }
 0x28a   : > { %v3513_v22 = vrot.slane %v3511_v47, 2  ;;  %v3263_v59 = vcombine.high %v3255_v43, %v3255_v43  ;;  %v3264_v27 = vcombine.high %v3262_v39, %v3262_v39  ;;  %v3514_v61 = vrot.slane %v3414_v48, 7 }
 0x28b   : > { %v3895_v41 = vcombine.low %v7279_v23, %v3414_v48  ;;  %v3342_v62 = vmax.f32 %v3262_v39, 0.0  ;;  %v3231_v13 = vcombine.high %v3151_v55, %v3151_v55  ;;  %v3340_v32 = vmax.f32 %v3255_v43, 0.0 }
 0x28c   : > { %v3341_v63 = vmax.f32 %v3263_v59, 0.0  ;;  %v3343_v57 = vmax.f32 %v3264_v27, 0.0  ;;  %v3238_v16 = vrot.slane %v3151_v55, %v6236_v24  ;;  %v7311_v21 = vmul.f32 %v7286_v6, %v3331_v18 }
 0x28d   : > { %v5126_v31 = vrot.slane %v7303_v42, 9  ;;  %v3245_v10 = vrot.slane %v3231_v13, %v6236_v24  ;;  %v2971_v52 = vadd.f32 %v2956_v8, %v7233_v5  ;;  %v7320_v36 = vmul.f32 %v7248_v28, %v3342_v62 }
 0x28e   : > { %v7317_v34 = vmul.f32 %v7286_v6, %v3341_v63  ;;  %v3246_v17 = vcombine.high %v3238_v16, %v3238_v16  ;;  %v3336_v60 = vmax.f32 %v3238_v16, 0.0  ;;  %v5127_v46 = vrot.slane %v7299_v9, 9 }
 0x28f   : > { %v7325_v25 = vsel %vm6319_vm9, %v3513_v22, %v3514_v61  ;;  %v3247_v15 = vcombine.high %v3245_v10, %v3245_v10  ;;  %v3338_v7 = vmax.f32 %v3245_v10, 0.0  ;;  %v7328_v3 = vrot.slane %v3895_v41, %v6236_v24 }
 0x290   : > { %v7331_v5 = vmul.f32 %v7265_v44, %v3340_v32  ;;  %v7334_v8 = vmul.f32 %v7257_v45, %v3343_v57  ;;  %v3337_v0 = vmax.f32 %v3246_v17, 0.0  ;;  %v7337_v19 = vmul.f32 %v7286_v6, %v3336_v60 }
 0x291   : > { %v3339_v40 = vmax.f32 %v3247_v15, 0.0  ;;  %v7340_v14 = vmul.f32 %v7257_v45, %v3338_v7  ;;  %v3138_v29 = vadd.f32 %v7231_v26, %v2971_v52  ;;  %v4163_v49 = vrot.slane %v7317_v34, 7 }
 0x292   : > { %v4166_v12 = vrot.slane %v7320_v36, 7  ;;  %v7346_v51 = vmul.f32 %v7248_v28, %v3337_v0  ;;  %v3133_v54 = vadd.f32 %v5628_v53, %v7235_v37  ;;  %v3531_v48 = vrot.slane %v7337_v19, 7 }
 0x293   : > { %v7350_v35 = vmul.f32 %v7276_v4, %v3339_v40  ;;  %v3153_v55 = vadd.f32 %v7244_v58, %v3138_v29  ;;  %v7355_v45 = vmul.f32 %v7276_v4, %v3334_v11  ;;  %v3518_v39 = vrot.slane %v7311_v21, 7 }
 0x294   : > { %v3534_v26 = vrot.slane %v7346_v51, 7  ;;  %v3148_v43 = vadd.f32 %v7244_v58, %v3133_v54  ;;  %v3523_v18 = vrot.slane %v3521_v33, 2  ;;  %v3533_v37 = vrot.slane %v3531_v48, 2 }
 0x295   : > { %v3537_v53 = vrot.slane %v7340_v14, 7  ;;  %v3272_v22 = vrot.slane %v3153_v55, %v6236_v24  ;;  %v3526_v59 = vrot.slane %v3524_v20, 2  ;;  %v3540_v61 = vrot.slane %v7350_v35, 7 }
 0x296   : > { %v3536_v27 = vrot.slane %v3534_v26, 2  ;;  %v3180_v11 = vcombine.high %v3148_v43, %v3148_v43  ;;  %v3187_v41 = vrot.slane %v3148_v43, %v6236_v24  ;;  %v3519_v58 = vsel %vm6319_vm9, %v5126_v31, %v3518_v39 }
 0x297   : > { %v3344_v62 = vmax.f32 %v3272_v22, 0.0  ;;  %v3520_v13 = vrot.slane %v3518_v39, 2  ;;  %v3527_v32 = vrot.slane %v7355_v45, 7  ;;  %v3525_v16 = vsel %vm6319_vm9, %v3523_v18, %v3524_v20 }
 0x298   : > { %v3194_v63 = vrot.slane %v3180_v11, %v6236_v24  ;;  %v3195_v57 = vcombine.high %v3187_v41, %v3187_v41  ;;  %v3532_v10 = vsel %vm6319_vm9, %v5127_v46, %v3531_v48  ;;  %v3535_v60 = vsel %vm6319_vm9, %v3533_v37, %v3534_v26 }
 0x299   : > { %v7375_v52 = vmul.f32 %v7276_v4, %v3344_v62  ;;  %v3522_v31 = vsel %vm6319_vm9, %v3520_v13, %v3521_v33  ;;  %v3528_v17 = vsel %vm6319_vm9, %v3526_v59, %v3527_v32  ;;  %v3538_v40 = vsel %vm6319_vm9, %v3536_v27, %v3537_v53 }
 0x29a   : > { %v3196_v15 = vcombine.high %v3194_v63, %v3194_v63  ;;  %v3325_v7 = vmax.f32 %v3195_v57, 0.0  ;;  %v3326_v20 = vmax.f32 %v3194_v63, 0.0  ;;  %v3582_v0 = vcombine.low %v3519_v58, %v3522_v31 }
 0x29b   : > { %v4295_v46 = vcombine.low %v7334_v8, %v7375_v52  ;;  %v3583_v4 = vcombine.low %v3525_v16, %v3528_v17  ;;  %v3539_v29 = vrot.slane %v3537_v53, 2  ;;  %v3599_v39 = vcombine.low %v3532_v10, %v3535_v60 }
 0x29c   : > { %v3327_v54 = vmax.f32 %v3196_v15, 0.0  ;;  %v3410_v33 = vmul.f32 %v7265_v44, %v3325_v7  ;;  %v3411_v48 = vmul.f32 %v7286_v6, %v3326_v20  ;;  %v3590_v55 = vrot.slane %v3582_v0, %v6236_v24 }
 0x29d   : > { %v3597_v26 = vrot.slane %v3583_v4, %v6236_v24  ;;  %v3541_v43 = vsel %vm6319_vm9, %v3539_v29, %v3540_v61  ;;  %v3744_v18 = vcombine.low %v7303_v42, %v7311_v21  ;;  %v3607_v6 = vrot.slane %v3599_v39, %v6236_v24 }
 0x29e   : > { %v3412_v37 = vmul.f32 %v7248_v28, %v3327_v54  ;;  %v5125_v22 = vrot.slane %v3410_v33, 9  ;;  %v3505_v53 = vrot.slane %v3411_v48, 7  ;;  %v3727_v59 = vcombine.low %v3410_v33, %v3411_v48 }
 0x29f   : > { %v7398_v27 = vcombine.low %v3590_v55, %v3597_v26  ;;  %v3600_v44 = vcombine.low %v3538_v40, %v3541_v43  ;;  %v3745_v11 = vcombine.low %v7271_v30, %v7282_v2  ;;  %v3752_v32 = vrot.slane %v3744_v18, %v6236_v24 }
 0x2a0   : > { %v3506_v61 = vsel %vm6319_vm9, %v5125_v22, %v3505_v53  ;;  %v3507_v41 = vrot.slane %v3505_v53, 2  ;;  %v3508_v62 = vrot.slane %v3412_v37, 7  ;;  %v3728_v42 = vcombine.low %v3412_v37, %v7279_v23  ;;  %v3467_v23 = vld [vmem:[%s7724_s3 + $0x10] sm:$0xff] }
 0x2a1   : > { %v3735_v28 = vrot.slane %v3727_v59, %v6236_v24  ;;  %v3894_v58 = vcombine.low %v3411_v48, %v3412_v37  ;;  %v3614_v13 = vrot.slane %v3600_v44, %v6236_v24  ;;  %v3759_v10 = vrot.slane %v3745_v11, %v6236_v24 }
 0x2a2   : > { %v3509_v63 = vsel %vm6319_vm9, %v3507_v41, %v3508_v62  ;;  %v3510_v57 = vrot.slane %v3508_v62, 2  ;;  %v3742_v16 = vrot.slane %v3728_v42, %v6236_v24  ;;  %v3761_v15 = vcombine.low %v7299_v9, %v7337_v19 }
 0x2a3   : > { %v3565_v31 = vcombine.low %v3506_v61, %v3509_v63  ;;  %v3902_v17 = vrot.slane %v3894_v58, %v6236_v24  ;;  %v7414_v60 = vcombine.low %v3607_v6, %v3614_v13  ;;  %v7424_v0 = vcombine.low %v3752_v32, %v3759_v10  ;;  %v5143_v13 = vld [vmem:[%s7724_s3 + $0x60] sm:$0xff]  ;;  %v5144_v32 = vld [vmem:[%s7724_s3 + $0x68] sm:$0xff]  ;;  %v5145_v10 = vld [vmem:[%s7724_s3 + $0x70] sm:$0xff] }
 0x2a4   : > { %v3512_v7 = vsel %vm6319_vm9, %v3510_v57, %v3511_v47  ;;  %v7422_v20 = vcombine.low %v3735_v28, %v3742_v16  ;;  %v3762_v4 = vcombine.low %v7346_v51, %v7340_v14  ;;  %v4165_v40 = vrot.slane %v4163_v49, 2  ;;  %v3468_v47 = vld [vmem:[%s7724_s3 + $0x18] sm:$0xff]  ;;  %v5141_v28 = vld [vmem:[%s7724_s3 + $0x50] sm:$0xff] }
 0x2a5   : > { %v4169_v29 = vrot.slane %v7334_v8, 7  ;;  %v3566_v54 = vcombine.low %v3512_v7, %v7325_v25  ;;  %v7433_v9 = vcombine.low %v3902_v17, %v7328_v3  ;;  %v3769_v33 = vrot.slane %v3761_v15, %v6236_v24  ;;  %v5151_v17 = vld [vmem:[%s7724_s3 + $0x80] sm:$0xff]  ;;  %v5152_v7 = vld [vmem:[%s7724_s3 + $0x88] sm:$0xff] }
 0x2a6   : > { %v3776_v48 = vrot.slane %v3762_v4, %v6236_v24  ;;  %v3911_v55 = vcombine.low %v7311_v21, %v7271_v30  ;;  %v3912_v25 = vcombine.low %v7282_v2, %v7355_v45  ;;  %v5159_v3 = vrot.slane %v7331_v5, 9  ;;  %v5153_v4 = vld [vmem:[%s7724_s3 + $0x90] sm:$0xff] }
 0x2a7   : > { %v3573_v26 = vrot.slane %v3565_v31, %v6236_v24  ;;  %v3580_v43 = vrot.slane %v3566_v54, %v6236_v24  ;;  %v3718_v39 = vrot.slane %v7296_v38, %v6236_v24  ;;  %v4172_v18 = vrot.slane %v7375_v52, 7  ;;  %v5150_v31 = vld [vmem:[%s7724_s3 + $0x78] sm:$0xff] }
 0x2a8   : > { %v7453_v37 = vcombine.low %v3769_v33, %v3776_v48  ;;  %v3919_v22 = vrot.slane %v3911_v55, %v6236_v24  ;;  %v3926_v30 = vrot.slane %v3912_v25, %v6236_v24  ;;  %v5902_v2 = vpack.c.bf16 %v3468_v47, %v3467_v23  ;;  %v5161_v47 = vld [vmem:[%s7724_s3 + $0xa8] sm:$0xff]  ;;  %v5162_v48 = vld [vmem:[%s7724_s3 + $0xb0] sm:$0xff]  ;;  %v5163_v55 = vld [vmem:[%s7724_s3 + $0xb8] sm:$0xff] }
 0x2a9   : > { %v7457_v21 = vcombine.low %v3573_v26, %v3580_v43  ;;  %v4164_v45 = vsel %vm6319_vm9, %v5159_v3, %v4163_v49  ;;  %v4167_v38 = vsel %vm6319_vm9, %v4165_v40, %v4166_v12  ;;  %v4168_v59 = vrot.slane %v4166_v12, 2  ;;  %v5170_v43 = vld [vmem:[%s7724_s3 + $0xd0] sm:$0xff] }
 0x2aa   : > { %v7463_v53 = vcombine.low %v3919_v22, %v3926_v30  ;;  %v4171_v44 = vrot.slane %v4169_v29, 2  ;;  %v7473_v6 = vcombine.low %v3718_v39, %v3718_v39  ;;  %v4180_v11 = vcombine.low %v4164_v45, %v4167_v38  ;;  %v5172_v39 = vld [vmem:[%s7724_s3 + $0xe0] sm:$0xff]  ;;  %v5173_v30 = vld [vmem:[%s7724_s3 + $0xe8] sm:$0xff] }
 0x2ab   : > { %5649 = vmatmul.mubr.msk.f32.vlgmr.msra.gmra.mrb[14].mxu1 %vm3616_vm13, %v7457_v21  ;;  %v4294_v49 = vcombine.low %v7317_v34, %v7320_v36  ;;  %v4170_v61 = vsel %vm6319_vm9, %v4168_v59, %v4169_v29  ;;  %v4309_v41 = vrot.slane %v4295_v46, %v6236_v24  ;;  %v5906_v63 = vpack.c.bf16 %v5142_v50, %v5141_v28  ;;  %v5180_v45 = vld [vmem:[%s7724_s3 + $0x100] sm:$0xff]  ;;  %v5181_v38 = vld [vmem:[%s7724_s3 + $0x108] sm:$0xff]  ;;  %v5200_v28 = vld [vmem:[%s7724_s3 + $0x158] sm:$0xff] }
 0x2ac   : > { %5901 = vmatpush3.bf16.msra.mxu1 %v7226_v56  ;;  %5651 = vmatprep.mubr.msk.f32.mxu1 %vm3616_vm13, %v7398_v27  ;;  %v4173_v12 = vsel %vm6319_vm9, %v4171_v44, %v4172_v18  ;;  %v3469_v56 = vld [vmem:[%s7724_s3 + $0x20] sm:$0xff]  ;;  %v4188_v52 = vrot.slane %v4180_v11, %v6236_v24  ;;  %v5910_v16 = vpack.c.bf16 %v5144_v32, %v5143_v13  ;;  %v5188_v11 = vld [vmem:[%s7724_s3 + $0x118] sm:$0xff] }
 0x2ad   : > { %5903 = vmatprep.subr.bf16.mxu1 %v5902_v2  ;;  %v4181_v62 = vcombine.low %v4170_v61, %v4173_v12  ;;  %v4302_v42 = vrot.slane %v4294_v49, %v6236_v24  ;;  %v3929_v15 = vcombine.low %v7340_v14, %v7350_v35  ;;  %v5914_v40 = vpack.c.bf16 %v5151_v17, %v5150_v31  ;;  %v5189_v49 = vld [vmem:[%s7724_s3 + $0x120] sm:$0xff]  ;;  %v5190_v61 = vld [vmem:[%s7724_s3 + $0x128] sm:$0xff]  ;;  %v5191_v12 = vld [vmem:[%s7724_s3 + $0x130] sm:$0xff] }
 0x2ae   : > { %v3928_v29 = vcombine.low %v7337_v19, %v7346_v51  ;;  %v5918_v14 = vpack.c.bf16 %v5153_v4, %v5152_v7  ;;  %v5154_v19 = vld [vmem:[%s7724_s3 + $0x98] sm:$0xff]  ;;  %v5160_v51 = vld [vmem:[%s7724_s3 + $0xa0] sm:$0xff]  ;;  %v4053_v33 = vcombine.low %v7320_v36, %v7334_v8  ;;  %v4052_v25 = vcombine.low %v7331_v5, %v7317_v34  ;;  %v5169_v5 = vld [vmem:[%s7724_s3 + $0xc8] sm:$0xff] }
 0x2af   : > { %5652 = vmatmul.mubr.msk.f32.gmra.mrb[16].mxu1 %vm3616_vm13, %v7414_v60  ;;  %v4195_v46 = vrot.slane %v4181_v62, %v6236_v24  ;;  %v7502_v58 = vcombine.low %v4302_v42, %v4309_v41  ;;  %v3943_v54 = vrot.slane %v3929_v15, %v6236_v24  ;;  %v5922_v3 = vpack.c.bf16 %v5161_v47, %v5160_v51  ;;  %v5164_v34 = vld [vmem:[%s7724_s3 + $0xc0] sm:$0xff] }
 0x2b0   : > { %5905 = vmatpush3.bf16.msra.mxu1 %v5902_v2  ;;  %5664 = vmatprep.mubr.msk.f32.mxu1 %vm3616_vm13, %v7473_v6  ;;  %v3936_v35 = vrot.slane %v3928_v29, %v6236_v24  ;;  %v4067_v26 = vrot.slane %v4053_v33, %v6236_v24  ;;  %v5926_v36 = vpack.c.bf16 %v5163_v55, %v5162_v48  ;;  %v5179_v2 = vld [vmem:[%s7724_s3 + $0xf8] sm:$0xff]  ;;  %v5197_v42 = vld [vmem:[%s7724_s3 + $0x140] sm:$0xff] }
 0x2b1   : > { %5662 = vmatprep.subr.mxu1 %v3469_v56  ;;  %v7512_v57 = vcombine.low %v4188_v52, %v4195_v46  ;;  %v4060_v8 = vrot.slane %v4052_v25, %v6236_v24  ;;  %v5171_v24 = vld [vmem:[%s7724_s3 + $0xd8] sm:$0xff]  ;;  %v5930_v18 = vpack.c.bf16 %v5170_v43, %v5169_v5  ;;  %v5942_v44 = vpack.c.bf16 %v5181_v38, %v5180_v45 }
 0x2b2   : > { %v7547_v23 = vcombine.low %v3936_v35, %v3943_v54  ;;  %v5934_v22 = vpack.c.bf16 %v5172_v39, %v5171_v24  ;;  %v5946_v41 = vpack.c.bf16 %v5189_v49, %v5188_v11  ;;  %v5950_v62 = vpack.c.bf16 %v5191_v12, %v5190_v61 }
 0x2b4   : > { %5663 = vmatpush3.msra.mxu1 %v3469_v56  ;;  %v5198_v56 = vld [vmem:[%s7724_s3 + $0x148] sm:$0xff] }
 0x2b5   : > { %5665 = vmatmul.mubr.msk.f32.vlgmr.msra.gmra.mrb[14].mxu1 %vm3616_vm13, %v7422_v20  ;;  %5907 = vmatprep.subr.bf16.mxu1 %v5906_v63  ;;  %v5954_v50 = vpack.c.bf16 %v5198_v56, %v5197_v42 }
 0x2b6   : > { %5667 = vmatprep.mubr.msk.f32.mxu1 %vm3616_vm13, %v7424_v0  ;;  %5909 = vmatpush3.bf16.msra.mxu1 %v5906_v63 }
 0x2b7   : > { %5911 = vmatprep.subr.bf16.mxu1 %v5910_v16 }
 0x2b9   : > { %5668 = vmatmul.mubr.msk.f32.gmra.mrb[16].mxu1 %vm3616_vm13, %v7453_v37 }
 0x2ba   : > { %5913 = vmatpush3.bf16.msra.mxu1 %v5910_v16  ;;  %5680 = vmatprep.mubr.msk.f32.mxu1 %vm3616_vm13, %v7473_v6 }
 0x2bb   : > { %5678 = vmatprep.subr.mxu1 %v5145_v10 }
 0x2be   : > { %5679 = vmatpush3.msra.mxu1 %v5145_v10 }
 0x2bf   : > { %5681 = vmatmul.mubr.msk.f32.vlgmr.msra.gmra.mrb[14].mxu1 %vm3616_vm13, %v7433_v9  ;;  %5915 = vmatprep.subr.bf16.mxu1 %v5914_v40 }
 0x2c0   : > { %5683 = vmatprep.mubr.msk.f32.mxu1 %vm3616_vm13, %v7463_v53  ;;  %5917 = vmatpush3.bf16.msra.mxu1 %v5914_v40 }
 0x2c1   : > { %5919 = vmatprep.subr.bf16.mxu1 %v5918_v14 }
 0x2c3   : > { %5684 = vmatmul.mubr.msk.f32.gmra.mrb[16].mxu1 %vm3616_vm13, %v7547_v23 }
 0x2c4   : > { %5921 = vmatpush3.bf16.msra.mxu1 %v5918_v14  ;;  %5696 = vmatprep.mubr.msk.f32.mxu1 %vm3616_vm13, %v7422_v20  ;;  %v4068_v20 = vcombine.low %v4060_v8, %v4067_v26 }
 0x2c5   : > { %5694 = vmatprep.subr.mxu1 %v5154_v19 }
 0x2c8   : > { %5695 = vmatpush3.msra.mxu1 %v5154_v19 }
 0x2c9   : > { %5697 = vmatmul.mubr.msk.f32.vlgmr.msra.gmra.mrb[14].mxu1 %vm3616_vm13, %v7424_v0  ;;  %5923 = vmatprep.subr.bf16.mxu1 %v5922_v3 }
 0x2ca   : > { %5699 = vmatprep.mubr.msk.f32.mxu1 %vm3616_vm13, %v7453_v37  ;;  %5925 = vmatpush3.bf16.msra.mxu1 %v5922_v3 }
 0x2cb   : > { %5927 = vmatprep.subr.bf16.mxu1 %v5926_v36 }
 0x2cd   : > { %5700 = vmatmul.mubr.msk.f32.gmra.mrb[16].mxu1 %vm3616_vm13, %v4068_v20 }
 0x2ce   : > { %5929 = vmatpush3.bf16.msra.mxu1 %v5926_v36  ;;  %5712 = vmatprep.mubr.msk.f32.mxu1 %vm3616_vm13, %v7457_v21  ;;  %v5178_v21 = vld [vmem:[%s7724_s3 + $0xf0] sm:$0xff] }
 0x2cf   : > { %5710 = vmatprep.subr.mxu1 %v5164_v34  ;;  %v5938_v59 = vpack.c.bf16 %v5179_v2, %v5178_v21 }
 0x2d2   : > { %5711 = vmatpush3.msra.mxu1 %v5164_v34 }
 0x2d3   : > { %5713 = vmatmul.mubr.msk.f32.vlgmr.msra.gmra.mrb[14].mxu1 %vm3616_vm13, %v7398_v27  ;;  %5931 = vmatprep.subr.bf16.mxu1 %v5930_v18 }
 0x2d4   : > { %5715 = vmatprep.mubr.msk.f32.mxu1 %vm3616_vm13, %v7414_v60  ;;  %5933 = vmatpush3.bf16.msra.mxu1 %v5930_v18 }
 0x2d5   : > { %5935 = vmatprep.subr.bf16.mxu1 %v5934_v22 }
 0x2d7   : > { %5716 = vmatmul.mubr.msk.f32.gmra.mrb[16].mxu1 %vm3616_vm13, %v7512_v57 }
 0x2d8   : > { %5937 = vmatpush3.bf16.msra.mxu1 %v5934_v22  ;;  %5728 = vmatprep.mubr.msk.f32.mxu1 %vm3616_vm13, %v7433_v9  ;;  %v5182_v9 = vld [vmem:[%s7724_s3 + $0x110] sm:$0xff] }
 0x2d9   : > { %5726 = vmatprep.subr.mxu1 %v5173_v30 }
 0x2dc   : > { %5727 = vmatpush3.msra.mxu1 %v5173_v30 }
 0x2dd   : > { %5729 = vmatmul.mubr.msk.f32.vlgmr.msra.gmra.mrb[14].mxu1 %vm3616_vm13, %v7463_v53  ;;  %5939 = vmatprep.subr.bf16.mxu1 %v5938_v59 }
 0x2de   : > { %5731 = vmatprep.mubr.msk.f32.mxu1 %vm3616_vm13, %v7547_v23  ;;  %5941 = vmatpush3.bf16.msra.mxu1 %v5938_v59 }
 0x2df   : > { %5943 = vmatprep.subr.bf16.mxu1 %v5942_v44 }
 0x2e1   : > { %5732 = vmatmul.mubr.msk.f32.gmra.mrb[16].mxu1 %vm3616_vm13, %v7502_v58 }
 0x2e2   : > { %5945 = vmatpush3.bf16.msra.mxu1 %v5942_v44  ;;  %5744 = vmatprep.mubr.msk.f32.mxu1 %vm3616_vm13, %v7424_v0  ;;  %v5192_v0 = vld [vmem:[%s7724_s3 + $0x138] sm:$0xff] }
 0x2e3   : > { %5742 = vmatprep.subr.mxu1 %v5182_v9 }
 0x2e6   : > { %5743 = vmatpush3.msra.mxu1 %v5182_v9 }
 0x2e7   : > { %5745 = vmatmul.mubr.msk.f32.vlgmr.msra.gmra.mrb[14].mxu1 %vm3616_vm13, %v7453_v37  ;;  %5947 = vmatprep.subr.bf16.mxu1 %v5946_v41  ;;  %v5199_v37 = vld [vmem:[%s7724_s3 + $0x150] sm:$0xff] }
 0x2e8   : > { %5747 = vmatprep.mubr.msk.f32.mxu1 %vm3616_vm13, %v4068_v20  ;;  %5949 = vmatpush3.bf16.msra.mxu1 %v5946_v41  ;;  %v5958_v52 = vpack.c.bf16 %v5200_v28, %v5199_v37 }
 0x2e9   : > { %5951 = vmatprep.subr.bf16.mxu1 %v5950_v62 }
 0x2eb   : > { %5748 = vmatmul.mubr.msk.f32.gmra.mrb[16].mxu1 %vm3616_vm13, %v7473_v6 }
 0x2ec   : > { %5953 = vmatpush3.bf16.msra.mxu1 %v5950_v62  ;;  %5760 = vmatprep.mubr.msk.f32.mxu1 %vm3616_vm13, %v7398_v27  ;;  %v5201_v27 = vld [vmem:[%s7724_s3 + $0x160] sm:$0xff] }
 0x2ed   : > { %5758 = vmatprep.subr.mxu1 %v5192_v0 }
 0x2f0   : > { %5759 = vmatpush3.msra.mxu1 %v5192_v0 }
 0x2f1   : > { %5761 = vmatmul.mubr.msk.f32.vlgmr.msra.gmra.mrb[14].mxu1 %vm3616_vm13, %v7414_v60  ;;  %5955 = vmatprep.subr.bf16.mxu1 %v5954_v50  ;;  %v5206_v60 = vld [vmem:[%s7725_s4] ss:$0 sm:$0xff] }
 0x2f2   : > { %5763 = vmatprep.mubr.msk.f32.mxu1 %vm3616_vm13, %v7512_v57  ;;  %5957 = vmatpush3.bf16.msra.mxu1 %v5954_v50 }
 0x2f3   : > { %5959 = vmatprep.subr.bf16.mxu1 %v5958_v52 }
 0x2f5   : > { %5764 = vmatmul.mubr.msk.f32.gmra.mrb[16].mxu1 %vm3616_vm13, %v7224_v1 }
 0x2f6   : > { %5961 = vmatpush3.bf16.msra.mxu1 %v5958_v52  ;;  %5776 = vmatprep.mubr.msk.f32.mxu1 %vm3616_vm13, %v7463_v53 }
 0x2f7   : > { %5774 = vmatprep.subr.mxu1 %v5201_v27 }
 0x2fa   : > { %5775 = vmatpush3.msra.mxu1 %v5201_v27 }
 0x2fb   : > { %5777 = vmatmul.mubr.msk.f32.vlgmr.msra.gmra.mrb[14].mxu1 %vm3616_vm13, %v7547_v23 }
 0x2fc   : > { %5779 = vmatprep.mubr.msk.f32.mxu1 %vm3616_vm13, %v7502_v58 }
 0x2ff   : > { %5780 = vmatmul.mubr.msk.f32.gmra.mrb[16].mxu1 %vm3616_vm13, %v7473_v6 }
 0x3ce   : > { %v5778_v1 = vpop.f32.mrb[14].mxu1 }
 0x3cf   : > { %v4770_v46 = vadd.f32 %v5778_v1, %v5206_v60  ;;  %v4739_v13 = vpop.f32.mrb[15].mxu1 }
 0x3d0   : > { %v4769_v32 = vadd.f32 %v5206_v60, %v4739_v13 }
 0x3d1   : > { %v5208_v53 = vmul.f32 -1.442695, %v4770_v46 }
 0x3d2   : > { %v5207_v63 = vmul.f32 -1.442695, %v4769_v32  ;;  %v5781_v57 = vpop.f32.mrb[16].mxu1 }
 0x3d3   : > { %6065 = vpow2.f32 %v5208_v53  ;;  %v4772_v16 = vadd.f32 %v5781_v57, %v5206_v60  ;;  %v4749_v10 = vpop.f32.mrb[17].mxu1 }
 0x3d4   : > { %6067 = vpow2.f32 %v5207_v63  ;;  %v4771_v31 = vadd.f32 %v5206_v60, %v4749_v10 }
 0x3d5   : > { %v5210_v58 = vmul.f32 -1.442695, %v4772_v16 }
 0x3d6   : > { %v5209_v17 = vmul.f32 -1.442695, %v4771_v31 }
 0x3d7   : > { %6069 = vpow2.f32 %v5210_v58 }
 0x3d8   : > { %6071 = vpow2.f32 %v5209_v17 }
 0x3dd   : > { %v6066_v6 = vpop.eup %6065 }
 0x3de   : > { %v6068_v15 = vpop.eup %6067  ;;  %v4786_v7 = vadd.f32 1.0, %v6066_v6 }
 0x3df   : > { %v4785_v4 = vadd.f32 1.0, %v6068_v15 }
 0x3e0   : > { %6073 = vrcp.f32 %v4786_v7 }
 0x3e1   : > { %v6070_v40 = vpop.eup %6069  ;;  %6075 = vrcp.f32 %v4785_v4 }
 0x3e2   : > { %v6072_v29 = vpop.eup %6071  ;;  %v4788_v54 = vadd.f32 1.0, %v6070_v40 }
 0x3e3   : > { %v4787_v14 = vadd.f32 1.0, %v6072_v29 }
 0x3e4   : > { %6077 = vrcp.f32 %v4788_v54 }
 0x3e5   : > { %6079 = vrcp.f32 %v4787_v14 }
 0x3ea   : > { %v6074_v35 = vpop.eup %6073 }
 0x3eb   : > { %v6076_v23 = vpop.eup %6075  ;;  %v4798_v19 = vadd.f32 1.0, %v6074_v35 }
 0x3ec   : > { %v4797_v51 = vadd.f32 1.0, %v6076_v23 }
 0x3ed   : > { %v4824_v47 = vrot.slane %v4798_v19, 1  ;;  %v4850_v33 = vrot.slane %v4798_v19, 4  ;;  %v4860_v48 = vrot.slane %v4798_v19, 5  ;;  %v4833_v55 = vrot.slane %v4798_v19, 2 }
 0x3ee   : > { %v6078_v25 = vpop.eup %6077  ;;  %v4823_v3 = vrot.slane %v4797_v51, 2  ;;  %v4849_v26 = vrot.slane %v4797_v51, 5  ;;  %v4814_v36 = vrot.slane %v4797_v51, 1  ;;  %v4859_v8 = vrot.slane %v4797_v51, 6 }
 0x3ef   : > { %v6080_v20 = vpop.eup %6079  ;;  %v4800_v34 = vadd.f32 1.0, %v6078_v25  ;;  %v4832_v5 = vrot.slane %v4797_v51, 3  ;;  %v4869_v43 = vrot.slane %v4797_v51, 7  ;;  %v4870_v24 = vrot.slane %v4798_v19, 6 }
 0x3f0   : > { %v4799_v39 = vadd.f32 1.0, %v6080_v20  ;;  %v4825_v18 = vsel %vm4806_vm14, %v4824_v47, %v4823_v3  ;;  %v4851_v22 = vsel %vm4806_vm14, %v4850_v33, %v4849_v26  ;;  %v4815_v30 = vsel %vm4806_vm14, %v4798_v19, %v4814_v36 }
 0x3f1   : > { %v4827_v21 = vrot.slane %v4800_v34, 7  ;;  %v4854_v2 = vrot.slane %v4800_v34, 2  ;;  %v4818_v45 = vrot.slane %v4800_v34, 6  ;;  %v4861_v38 = vsel %vm4806_vm14, %v4860_v48, %v4859_v8 }
 0x3f2   : > { %v4826_v59 = vsel %vm997_vm4, %v4799_v39, %v4825_v18  ;;  %v4852_v44 = vrot.slane %v4799_v39, 3  ;;  %v4816_v9 = vrot.slane %v4799_v39, 7  ;;  %v4862_v11 = vrot.slane %v4799_v39, 4 }
 0x3f3   : > { %v4828_v49 = vsel %vm4811_vm15, %v4827_v21, %v4826_v59  ;;  %v4864_v61 = vrot.slane %v4800_v34, 3  ;;  %v4834_v12 = vsel %vm4806_vm14, %v4833_v55, %v4832_v5  ;;  %v4835_v41 = vrot.slane %v4799_v39, 1 }
 0x3f4   : > { %4829 = vrot.lane.b32.xlu0 %v4828_v49, %s6110_s15  ;;  %v4853_v62 = vsel %vm997_vm4, %v4852_v44, %v4851_v22  ;;  %v4817_v0 = vsel %vm997_vm4, %v4816_v9, %v4815_v30  ;;  %v4863_v42 = vsel %vm997_vm4, %v4862_v11, %v4861_v38  ;;  %v4871_v56 = vsel %vm4806_vm14, %v4870_v24, %v4869_v43 }
 0x3f5   : > { %v4855_v37 = vsel %vm4811_vm15, %v4854_v2, %v4853_v62  ;;  %v4819_v28 = vsel %vm4811_vm15, %v4818_v45, %v4817_v0  ;;  %v4865_v50 = vsel %vm4811_vm15, %v4864_v61, %v4863_v42  ;;  %v4836_v52 = vsel %vm997_vm4, %v4835_v41, %v4834_v12 }
 0x3f6   : > { %4856 = vrot.lane.b32.xlu1 %v4855_v37, %s6111_s16  ;;  %v4837_v27 = vsel %vm4811_vm15, %v4800_v34, %v4836_v52  ;;  %v4872_v60 = vrot.slane %v4799_v39, 5  ;;  %v4841_v1 = vrot.slane %v4797_v51, 4  ;;  %v4874_v46 = vrot.slane %v4800_v34, 4 }
 0x3f7   : > { %v4842_v13 = vrot.slane %v4798_v19, 3  ;;  %v4844_v32 = vrot.slane %v4799_v39, 2  ;;  %v4805_v53 = vrot.slane %v4798_v19, 7  ;;  %v4846_v57 = vrot.slane %v4800_v34, 1 }
 0x3f8   : > { %4820 = vrot.lane.b32.xlu0 %v4819_v28, %s6111_s16  ;;  %v4873_v63 = vsel %vm997_vm4, %v4872_v60, %v4871_v56  ;;  %v4808_v16 = vrot.slane %v4799_v39, 6  ;;  %v4810_v17 = vrot.slane %v4800_v34, 5 }
 0x3f9   : > { %v4875_v10 = vsel %vm4811_vm15, %v4874_v46, %v4873_v63  ;;  %v4843_v31 = vsel %vm4806_vm14, %v4842_v13, %v4841_v1  ;;  %v4807_v58 = vsel %vm4806_vm14, %v4805_v53, %v4797_v51 }
 0x3fa   : > { %4866 = vrot.lane.b32.xlu1 %v4865_v50, %s6110_s15  ;;  %v4845_v6 = vsel %vm997_vm4, %v4844_v32, %v4843_v31  ;;  %v4809_v15 = vsel %vm997_vm4, %v4808_v16, %v4807_v58 }
 0x3fb   : > { %v4847_v7 = vsel %vm4811_vm15, %v4846_v57, %v4845_v6  ;;  %v4812_v4 = vsel %vm4811_vm15, %v4810_v17, %v4809_v15 }
 0x3fc   : > { %4838 = vrot.lane.b32.xlu0 %v4837_v27, %s6112_s17 }
 0x3fe   : > { %4876 = vrot.lane.b32.xlu1 %v4875_v10, %s6112_s17 }
 0x466   : > { %v4830_v40 = vpop.permute.xlu0 %4829 }
 0x468   : > { %v4857_v29 = vpop.permute.xlu1 %4856 }
 0x469   : > { %v4885_v19 = vsel %vm4879_vm0, %v4847_v7, %v4857_v29 }
 0x46a   : > { %v4821_v54 = vpop.permute.xlu0 %4820 }
 0x46b   : > { %v4880_v35 = vsel %vm4879_vm0, %v4812_v4, %v4821_v54 }
 0x46c   : > { %v4867_v14 = vpop.permute.xlu1 %4866  ;;  %v4882_v47 = vsel %vm4881_vm1, %v4880_v35, %v4830_v40 }
 0x46d   : > { %v4886_v51 = vsel %vm4881_vm1, %v4885_v19, %v4867_v14 }
 0x46e   : > { %v4839_v23 = vpop.permute.xlu0 %4838 }
 0x46f   : > { %v4884_v48 = vsel %vm4883_vm2, %v4882_v47, %v4839_v23 }
 0x470   : > { %v4877_v33 = vpop.permute.xlu1 %4876 }
 0x471   : > { %v4887_v55 = vsel %vm4883_vm2, %v4886_v51, %v4877_v33 }
 0x472   : > { %v4890_v25 = vcombine.low %v4884_v48, %v4887_v55 }
 0x474   : > { %4892 = vst [vmem:[%s300_s20] sm:$0xff] %v4890_v25 }
 0x475 PF: > { %s17_s26 = sadd.s32 1, %s6103_s26   ;;  %s7844_s24 = smov %s6099_s25 }
 0x476   : > { %p14_p5 = scmp.ge.s32.totalorder %s17_s26, 4   ;;  %s7845_s25 = smov %s7847_s27 }
 0x478   :  { %16 = sbr.rel (!%p14_p5) target bundleno = 2 (0x2), region = 100 }

</bundles_post_ra>
